<compile_context>
chip_gen: v7x
topology: tpu7x:2x2x1
jax: 0.10.0
libtpu: 0.0.40
codegen_flags: <defaults>
</compile_context>

<pallas_src>
import math

import jax
import jax.numpy as jnp
from jax.experimental import pallas as pl
from jax.experimental.pallas import tpu as pltpu

# ----------------------------- model config (small, synthetic) ----------------
B = 2           # batch
S = 8           # sequence length (<= 512 -> single-chunk path of Bert.forward)
H = 128         # hidden size   (multiple of 128 -> lane-dense layout)
NH = 4          # attention heads
HD = H // NH    # head dim
I = 256         # intermediate (FFN) size
L = 2           # number of encoder layers
VOCAB = 100
MAX_POS = 16
TYPE_VOCAB = 2
LN_EPS = 1e-12

# rows of the packed per-layer vector block  (L, 16, H)
R_BQ, R_BK, R_BV, R_BO, R_B2, R_LN1G, R_LN1B, R_LN2G, R_LN2B = range(9)
# rows of the packed global vector block     (8, H)
G_EMB_G, G_EMB_B, G_POOL_B = range(3)

# advisory cost estimate (per full forward)
_FLOPS = L * (2 * B * S * (H * 3 * H + H * H + 2 * H * I)
              + 4 * B * NH * S * S * HD) + 2 * B * H * H
_TRANS = L * (B * NH * S * S + B * S * I) + B * H
_BYTES = (B * S * H * 4 + B * S * 4 + 8 * H * 4
          + L * (H * 3 * H + H * H + 2 * H * I) * 2     # bf16 weights
          + L * (16 * H + 8 * I) * 4 + H * H * 2
          + B * S * H * 4 + B * H * 4)


# ----------------------------- shared math helpers -----------------------------
def _layernorm(x2d, gamma, beta):
    # x2d: (N, H); gamma/beta: (1, H); all f32
    mean = jnp.mean(x2d, axis=-1, keepdims=True)
    cent = x2d - mean
    var = jnp.mean(cent * cent, axis=-1, keepdims=True)
    return cent * jax.lax.rsqrt(var + LN_EPS) * gamma + beta


def _gelu(x):
    # TODO(synk): HF BERT uses exact (erf) GELU; tanh approximation used here
    # for robust Mosaic lowering (EUP tanh).  Reference uses the same approx.
    return 0.5 * x * (1.0 + jnp.tanh(0.7978845608028654 * (x + 0.044715 * x * x * x)))


def _row(m, i):
    return m[i:i + 1, :]


# ----------------------------- fused encoder kernel ---------------------------
def _bert_encoder_kernel(emb_ref, mask_ref, gvec_ref,
                         wqkv_ref, wo_ref, w1_ref, w2_ref,
                         lvec_ref, ivec_ref, poolw_ref,
                         hid_ref, pooled_ref):
    layer = pl.program_id(0)

    # ---- prologue (layer 0 only): embedding LayerNorm into resident hidden ----
    @pl.when(layer == 0)
    def _():
        e = emb_ref[...].reshape(B * S, H)
        hid_ref[...] = _layernorm(
            e, _row(gvec_ref[...], G_EMB_G), _row(gvec_ref[...], G_EMB_B)
        ).reshape(B, S, H)

    x = hid_ref[...].reshape(B * S, H)          # f32 hidden, VMEM-resident
    lv = lvec_ref[0]                            # (16, H) packed biases / LN params
    iv = ivec_ref[0]                            # (8, I)  packed FFN bias
    mask_add = mask_ref[...]                    # (B, S) additive mask (0 / -1e4)

    # ---- fused QKV projection: one bf16 MXU dot, f32 accumulation ------------
    qkv = jnp.dot(x.astype(jnp.bfloat16), wqkv_ref[0],
                  preferred_element_type=jnp.float32)            # (B*S, 3H)
    q = (qkv[:, 0 * H:1 * H] + _row(lv, R_BQ)).reshape(B, S, H)
    k = (qkv[:, 1 * H:2 * H] + _row(lv, R_BK)).reshape(B, S, H)
    v = (qkv[:, 2 * H:3 * H] + _row(lv, R_BV)).reshape(B, S, H)

    # ---- stack heads along the leading axis -> (NH*B, S, HD) -----------------
    def split_heads(t):
        return jnp.concatenate(
            [t[:, :, h * HD:(h + 1) * HD] for h in range(NH)], axis=0)

    qh, kh, vh = split_heads(q), split_heads(k), split_heads(v)

    # ONE batched score einsum + ONE masked softmax over all heads
    s = jnp.einsum('bqd,bkd->bqk',
                   qh.astype(jnp.bfloat16), kh.astype(jnp.bfloat16),
                   preferred_element_type=jnp.float32) * (1.0 / math.sqrt(HD))
    mask_all = jnp.concatenate([mask_add] * NH, axis=0)          # (NH*B, S)
    s = s + mask_all[:, None, :]
    s = s - jnp.max(s, axis=-1, keepdims=True)
    p = jnp.exp(s)
    p = p * pl.reciprocal(jnp.sum(p, axis=-1, keepdims=True), approx=True)
    ctx = jnp.einsum('bqk,bkd->bqd',
                     p.astype(jnp.bfloat16), vh.astype(jnp.bfloat16),
                     preferred_element_type=jnp.float32)         # (NH*B, S, HD)

    # ---- merge heads; ONE full-width output-projection matmul ----------------
    ctx_flat = jnp.concatenate(
        [ctx[h * B:(h + 1) * B] for h in range(NH)], axis=-1).reshape(B * S, H)
    attn = jnp.dot(ctx_flat.astype(jnp.bfloat16), wo_ref[0],
                   preferred_element_type=jnp.float32) + _row(lv, R_BO)
    h1 = _layernorm(x + attn, _row(lv, R_LN1G), _row(lv, R_LN1B))

    # ---- FFN ------------------------------------------------------------------
    inter = _gelu(jnp.dot(h1.astype(jnp.bfloat16), w1_ref[0],
                          preferred_element_type=jnp.float32) + _row(iv, 0))
    ffn = jnp.dot(inter.astype(jnp.bfloat16), w2_ref[0],
                  preferred_element_type=jnp.float32) + _row(lv, R_B2)
    h2 = _layernorm(h1 + ffn, _row(lv, R_LN2G), _row(lv, R_LN2B))

    h2_3d = h2.reshape(B, S, H)
    hid_ref[...] = h2_3d                        # resident; single HBM writeback

    # ---- epilogue (last layer only): pooler on the CLS token ------------------
    @pl.when(layer == pl.num_programs(0) - 1)
    def _():
        cls = h2_3d[:, 0, :]                    # (B, H)
        pooled_ref[...] = jnp.tanh(
            jnp.dot(cls.astype(jnp.bfloat16), poolw_ref[...],
                    preferred_element_type=jnp.float32)
            + _row(gvec_ref[...], G_POOL_B))


# ----------------------------- full forward (Bert.forward, S <= 512) ----------
@jax.jit
def bert_forward(input_ids, attention_mask, params):
    # embedding gather is XLA glue; everything else runs inside one Pallas call.
    # TODO(synk): token_type is hardcoded to type 0 and positions assume
    # S <= MAX_POS, matching the synthetic config.
    word = jnp.take(params['word_emb'], input_ids, axis=0)            # (B, S, H)
    emb = (word + params['pos_emb'][:S][None, :, :]
           + params['tok_emb'][0][None, None, :]).astype(jnp.float32)
    mask_add = (1.0 - attention_mask.astype(jnp.float32)) * -10000.0  # (B, S)

    enc, pooled = pl.pallas_call(
        _bert_encoder_kernel,
        out_shape=(jax.ShapeDtypeStruct((B, S, H), jnp.float32),
                   jax.ShapeDtypeStruct((B, H), jnp.float32)),
        grid_spec=pltpu.PrefetchScalarGridSpec(
            num_scalar_prefetch=0,
            grid=(L,),
            in_specs=[
                pl.BlockSpec((B, S, H), lambda l: (0, 0, 0)),      # emb
                pl.BlockSpec((B, S), lambda l: (0, 0)),            # mask_add
                pl.BlockSpec((8, H), lambda l: (0, 0)),            # gvec
                pl.BlockSpec((1, H, 3 * H), lambda l: (l, 0, 0)),  # wqkv (bf16)
                pl.BlockSpec((1, H, H), lambda l: (l, 0, 0)),      # wo   (bf16)
                pl.BlockSpec((1, H, I), lambda l: (l, 0, 0)),      # w1   (bf16)
                pl.BlockSpec((1, I, H), lambda l: (l, 0, 0)),      # w2   (bf16)
                pl.BlockSpec((1, 16, H), lambda l: (l, 0, 0)),     # packed vecs
                pl.BlockSpec((1, 8, I), lambda l: (l, 0, 0)),      # packed FFN bias
                pl.BlockSpec((H, H), lambda l: (0, 0)),            # pool_w (bf16)
            ],
            out_specs=[
                pl.BlockSpec((B, S, H), lambda l: (0, 0, 0)),      # resident hidden
                pl.BlockSpec((B, H), lambda l: (0, 0)),            # pooled
            ],
        ),
        compiler_params=pltpu.CompilerParams(
            dimension_semantics=("arbitrary",)),
        cost_estimate=pl.CostEstimate(
            flops=_FLOPS, transcendentals=_TRANS, bytes_accessed=_BYTES),
    )(emb, mask_add, params['gvec'],
      params['wqkv'], params['wo'], params['w1'], params['w2'],
      params['lvec'], params['ivec'], params['pool_w'])
    return enc, pooled   # (encoder_outputs, h_cnode_batch)


# ----------------------------- pure-JAX reference (sanity check) --------------
def bert_forward_ref(input_ids, attention_mask, params):
    def bdot(a, w_bf16):
        return jnp.dot(a.astype(jnp.bfloat16), w_bf16,
                       preferred_element_type=jnp.float32)

    gv = params['gvec']
    word = jnp.take(params['word_emb'], input_ids, axis=0)
    emb = word + params['pos_emb'][:S][None] + params['tok_emb'][0][None, None]
    h = _layernorm(emb.reshape(B * S, H), _row(gv, G_EMB_G), _row(gv, G_EMB_B))
    mask_add = (1.0 - attention_mask.astype(jnp.float32)) * -10000.0

    for l in range(L):
        lv, iv = params['lvec'][l], params['ivec'][l]
        qkv = bdot(h, params['wqkv'][l])
        q = (qkv[:, :H] + _row(lv, R_BQ)).reshape(B, S, NH, HD)
        k = (qkv[:, H:2 * H] + _row(lv, R_BK)).reshape(B, S, NH, HD)
        v = (qkv[:, 2 * H:] + _row(lv, R_BV)).reshape(B, S, NH, HD)
        s = jnp.einsum('bqnd,bknd->bnqk',
                       q.astype(jnp.bfloat16), k.astype(jnp.bfloat16),
                       preferred_element_type=jnp.float32) * (1.0 / math.sqrt(HD))
        s = s + mask_add[:, None, None, :]
        p = jax.nn.softmax(s, axis=-1)
        ctx = jnp.einsum('bnqk,bknd->bqnd',
                         p.astype(jnp.bfloat16), v.astype(jnp.bfloat16),
                         preferred_element_type=jnp.float32).reshape(B * S, H)
        attn = bdot(ctx, params['wo'][l]) + _row(lv, R_BO)
        h1 = _layernorm(h + attn, _row(lv, R_LN1G), _row(lv, R_LN1B))
        inter = _gelu(bdot(h1, params['w1'][l]) + _row(iv, 0))
        h = _layernorm(h1 + bdot(inter, params['w2'][l]) + _row(lv, R_B2),
                       _row(lv, R_LN2G), _row(lv, R_LN2B))

    enc = h.reshape(B, S, H)
    pooled = jnp.tanh(bdot(enc[:, 0, :], params['pool_w']) + _row(gv, G_POOL_B))
    return enc, pooled


# ----------------------------- deterministic parameter init -------------------
def init_params(key):
    keys = iter(jax.random.split(key, 32))

    def nrm(shape, scale=0.02):
        return scale * jax.random.normal(next(keys), shape, jnp.float32)

    # packed per-layer vectors: [bq, bk, bv, bo, b2, ln1_g, ln1_b, ln2_g, ln2_b]
    rows = [nrm((L, H)), nrm((L, H)), nrm((L, H)), nrm((L, H)), nrm((L, H)),
            1.0 + nrm((L, H)), nrm((L, H)), 1.0 + nrm((L, H)), nrm((L, H))]
    rows += [jnp.zeros((L, H), jnp.float32)] * (16 - len(rows))
    lvec = jnp.stack(rows, axis=1)                                   # (L, 16, H)

    ivec = jnp.zeros((L, 8, I), jnp.float32).at[:, 0, :].set(nrm((L, I)))

    gvec = jnp.zeros((8, H), jnp.float32)
    gvec = gvec.at[G_EMB_G].set(1.0 + nrm((H,))).at[G_EMB_B].set(nrm((H,)))
    gvec = gvec.at[G_POOL_B].set(nrm((H,)))

    return dict(
        word_emb=nrm((VOCAB, H)),
        pos_emb=nrm((MAX_POS, H)),
        tok_emb=nrm((TYPE_VOCAB, H)),
        gvec=gvec,
        wqkv=nrm((L, H, 3 * H)).astype(jnp.bfloat16),
        wo=nrm((L, H, H)).astype(jnp.bfloat16),
        w1=nrm((L, H, I)).astype(jnp.bfloat16),
        w2=nrm((L, I, H)).astype(jnp.bfloat16),
        lvec=lvec,
        ivec=ivec,
        pool_w=nrm((H, H)).astype(jnp.bfloat16),
    )


# ----------------------------- main --------------------------------------------
if __name__ == "__main__":
    key = jax.random.PRNGKey(0)
    k_ids, k_par = jax.random.split(key)

    input_ids = jax.random.randint(k_ids, (B, S), 0, VOCAB, dtype=jnp.int32)
    attention_mask = jnp.ones((B, S), jnp.int32).at[1, S - 2:].set(0)  # pad tail

    params = init_params(k_par)

    enc_out, pooled = bert_forward(input_ids, attention_mask, params)
    jax.block_until_ready((enc_out, pooled))

    assert enc_out.shape == (B, S, H) and pooled.shape == (B, H)

    ref_enc, ref_pool = bert_forward_ref(input_ids, attention_mask, params)
    assert jnp.allclose(enc_out, ref_enc, atol=1e-2, rtol=1e-2), \
        float(jnp.max(jnp.abs(enc_out - ref_enc)))
    assert jnp.allclose(pooled, ref_pool, atol=1e-2, rtol=1e-2), \
        float(jnp.max(jnp.abs(pooled - ref_pool)))

    print("KERNEL_OK")
</pallas_src>

<mosaic_0001>
module attributes {stable_mosaic.version = 11 : i64} {
  func.func @_bert_encoder_kernel(%arg0: i32, %arg1: memref<2x8x128xf32, #tpu.memory_space<vmem>>, %arg2: memref<2x8xf32, #tpu.memory_space<vmem>>, %arg3: memref<8x128xf32, #tpu.memory_space<vmem>>, %arg4: memref<1x128x384xbf16, #tpu.memory_space<vmem>>, %arg5: memref<1x128x128xbf16, #tpu.memory_space<vmem>>, %arg6: memref<1x128x256xbf16, #tpu.memory_space<vmem>>, %arg7: memref<1x256x128xbf16, #tpu.memory_space<vmem>>, %arg8: memref<1x16x128xf32, #tpu.memory_space<vmem>>, %arg9: memref<1x8x256xf32, #tpu.memory_space<vmem>>, %arg10: memref<128x128xbf16, #tpu.memory_space<vmem>>, %arg11: memref<2x8x128xf32, #tpu.memory_space<vmem>>, %arg12: memref<2x128xf32, #tpu.memory_space<vmem>>) attributes {dimension_semantics = [#tpu.dimension_semantics<arbitrary>], iteration_bounds = array<i64: 2>, scalar_prefetch = 0 : i64, scratch_operands = 0 : i64, tpu.core_type = #tpu.core_type<tc>, window_params = [{pipeline_mode = #tpu.pipeline_mode<synchronous>, transform_indices = @transform_0, window_bounds = array<i64: 2, 8, 128>}, {pipeline_mode = #tpu.pipeline_mode<synchronous>, transform_indices = @transform_1, window_bounds = array<i64: 2, 8>}, {pipeline_mode = #tpu.pipeline_mode<synchronous>, transform_indices = @transform_2, window_bounds = array<i64: 8, 128>}, {transform_indices = @transform_3, window_bounds = array<i64: 1, 128, 384>}, {transform_indices = @transform_4, window_bounds = array<i64: 1, 128, 128>}, {transform_indices = @transform_5, window_bounds = array<i64: 1, 128, 256>}, {transform_indices = @transform_6, window_bounds = array<i64: 1, 256, 128>}, {transform_indices = @transform_7, window_bounds = array<i64: 1, 16, 128>}, {transform_indices = @transform_8, window_bounds = array<i64: 1, 8, 256>}, {pipeline_mode = #tpu.pipeline_mode<synchronous>, transform_indices = @transform_9, window_bounds = array<i64: 128, 128>}, {pipeline_mode = #tpu.pipeline_mode<synchronous>, transform_indices = @transform_10, window_bounds = array<i64: 2, 8, 128>}, {pipeline_mode = #tpu.pipeline_mode<synchronous>, transform_indices = @transform_11, window_bounds = array<i64: 2, 128>}]} {
    %c0_i32 = arith.constant 0 : i32
    %0 = arith.cmpi eq, %arg0, %c0_i32 : i32
    %1 = arith.extui %0 : i1 to i32
    %c0_i32_0 = arith.constant 0 : i32
    %2 = arith.cmpi ne, %1, %c0_i32_0 : i32
    scf.if %2 {
      %c0_49 = arith.constant 0 : index
      %c0_50 = arith.constant 0 : index
      %c0_51 = arith.constant 0 : index
      %157 = vector.load %arg1[%c0_49, %c0_50, %c0_51] : memref<2x8x128xf32, #tpu.memory_space<vmem>>, vector<2x8x128xf32>
      %158 = vector.shape_cast %157 : vector<2x8x128xf32> to vector<16x128xf32>
      %c0_52 = arith.constant 0 : index
      %c0_53 = arith.constant 0 : index
      %159 = vector.load %arg3[%c0_52, %c0_53] : memref<8x128xf32, #tpu.memory_space<vmem>>, vector<8x128xf32>
      %160 = vector.extract_strided_slice %159 {offsets = [0, 0], sizes = [1, 128], strides = [1, 1]} : vector<8x128xf32> to vector<1x128xf32>
      %c0_54 = arith.constant 0 : index
      %c0_55 = arith.constant 0 : index
      %161 = vector.load %arg3[%c0_54, %c0_55] : memref<8x128xf32, #tpu.memory_space<vmem>>, vector<8x128xf32>
      %162 = vector.extract_strided_slice %161 {offsets = [1, 0], sizes = [1, 128], strides = [1, 1]} : vector<8x128xf32> to vector<1x128xf32>
      %cst_56 = arith.constant dense<0.000000e+00> : vector<16xf32>
      %163 = vector.multi_reduction <add>, %158, %cst_56 [1] : vector<16x128xf32> to vector<16xf32>
      %164 = vector.shape_cast %163 : vector<16xf32> to vector<16x1xf32>
      %cst_57 = arith.constant 1.280000e+02 : f32
      %165 = vector.broadcast %cst_57 : f32 to vector<16x1xf32>
      %166 = arith.divf %164, %165 : vector<16x1xf32>
      %167 = vector.broadcast %166 : vector<16x1xf32> to vector<16x128xf32>
      %168 = arith.subf %158, %167 : vector<16x128xf32>
      %169 = arith.mulf %168, %168 : vector<16x128xf32>
      %cst_58 = arith.constant dense<0.000000e+00> : vector<16xf32>
      %170 = vector.multi_reduction <add>, %169, %cst_58 [1] : vector<16x128xf32> to vector<16xf32>
      %171 = vector.shape_cast %170 : vector<16xf32> to vector<16x1xf32>
      %cst_59 = arith.constant 1.280000e+02 : f32
      %172 = vector.broadcast %cst_59 : f32 to vector<16x1xf32>
      %173 = arith.divf %171, %172 : vector<16x1xf32>
      %cst_60 = arith.constant 9.99999996E-13 : f32
      %174 = vector.broadcast %cst_60 : f32 to vector<16x1xf32>
      %175 = arith.addf %173, %174 : vector<16x1xf32>
      %176 = math.rsqrt %175 : vector<16x1xf32>
      %177 = vector.broadcast %176 : vector<16x1xf32> to vector<16x128xf32>
      %178 = arith.mulf %168, %177 : vector<16x128xf32>
      %179 = vector.broadcast %160 : vector<1x128xf32> to vector<16x128xf32>
      %180 = arith.mulf %178, %179 : vector<16x128xf32>
      %181 = vector.broadcast %162 : vector<1x128xf32> to vector<16x128xf32>
      %182 = arith.addf %180, %181 : vector<16x128xf32>
      %183 = vector.shape_cast %182 : vector<16x128xf32> to vector<2x8x128xf32>
      %c0_61 = arith.constant 0 : index
      %c0_62 = arith.constant 0 : index
      %c0_63 = arith.constant 0 : index
      %184 = vector.load %arg11[%c0_61, %c0_62, %c0_63] : memref<2x8x128xf32, #tpu.memory_space<vmem>>, vector<2x8x128xf32>
      tpu.vector_store %arg11[%c0_61, %c0_62, %c0_63], %183 {strides = array<i32>} : memref<2x8x128xf32, #tpu.memory_space<vmem>>, vector<2x8x128xf32>,
    } else {
    }
    %c0 = arith.constant 0 : index
    %c0_1 = arith.constant 0 : index
    %c0_2 = arith.constant 0 : index
    %3 = vector.load %arg11[%c0, %c0_1, %c0_2] : memref<2x8x128xf32, #tpu.memory_space<vmem>>, vector<2x8x128xf32>
    %4 = vector.shape_cast %3 : vector<2x8x128xf32> to vector<16x128xf32>
    %c0_3 = arith.constant 0 : index
    %c0_4 = arith.constant 0 : index
    %c0_5 = arith.constant 0 : index
    %5 = vector.load %arg8[%c0_3, %c0_4, %c0_5] : memref<1x16x128xf32, #tpu.memory_space<vmem>>, vector<1x16x128xf32>
    %6 = vector.shape_cast %5 : vector<1x16x128xf32> to vector<16x128xf32>
    %c0_6 = arith.constant 0 : index
    %c0_7 = arith.constant 0 : index
    %c0_8 = arith.constant 0 : index
    %7 = vector.load %arg9[%c0_6, %c0_7, %c0_8] : memref<1x8x256xf32, #tpu.memory_space<vmem>>, vector<1x8x256xf32>
    %8 = vector.shape_cast %7 : vector<1x8x256xf32> to vector<8x256xf32>
    %c0_9 = arith.constant 0 : index
    %c0_10 = arith.constant 0 : index
    %9 = vector.load %arg2[%c0_9, %c0_10] : memref<2x8xf32, #tpu.memory_space<vmem>>, vector<2x8xf32>
    %10 = arith.truncf %4 : vector<16x128xf32> to vector<16x128xbf16>
    %c0_11 = arith.constant 0 : index
    %c0_12 = arith.constant 0 : index
    %c0_13 = arith.constant 0 : index
    %11 = vector.load %arg4[%c0_11, %c0_12, %c0_13] : memref<1x128x384xbf16, #tpu.memory_space<vmem>>, vector<1x128x384xbf16>
    %12 = vector.shape_cast %11 : vector<1x128x384xbf16> to vector<128x384xbf16>
    %cst = arith.constant dense<0.000000e+00> : vector<16x384xf32>
    %13 = tpu.matmul %10, %12, %cst {dimension_numbers = #tpu.dot_dimension_numbers<[1], [0], [0], [1], [0, 0, 1, 1], [], []>} : vector<16x128xbf16>, vector<128x384xbf16>, vector<16x384xf32> -> vector<16x384xf32>
    %14 = vector.extract_strided_slice %13 {offsets = [0, 0], sizes = [16, 128], strides = [1, 1]} : vector<16x384xf32> to vector<16x128xf32>
    %15 = vector.extract_strided_slice %6 {offsets = [0, 0], sizes = [1, 128], strides = [1, 1]} : vector<16x128xf32> to vector<1x128xf32>
    %16 = vector.broadcast %15 : vector<1x128xf32> to vector<16x128xf32>
    %17 = arith.addf %14, %16 : vector<16x128xf32>
    %18 = vector.shape_cast %17 : vector<16x128xf32> to vector<2x8x128xf32>
    %19 = vector.extract_strided_slice %13 {offsets = [0, 128], sizes = [16, 128], strides = [1, 1]} : vector<16x384xf32> to vector<16x128xf32>
    %20 = vector.extract_strided_slice %6 {offsets = [1, 0], sizes = [1, 128], strides = [1, 1]} : vector<16x128xf32> to vector<1x128xf32>
    %21 = vector.broadcast %20 : vector<1x128xf32> to vector<16x128xf32>
    %22 = arith.addf %19, %21 : vector<16x128xf32>
    %23 = vector.shape_cast %22 : vector<16x128xf32> to vector<2x8x128xf32>
    %24 = vector.extract_strided_slice %13 {offsets = [0, 256], sizes = [16, 128], strides = [1, 1]} : vector<16x384xf32> to vector<16x128xf32>
    %25 = vector.extract_strided_slice %6 {offsets = [2, 0], sizes = [1, 128], strides = [1, 1]} : vector<16x128xf32> to vector<1x128xf32>
    %26 = vector.broadcast %25 : vector<1x128xf32> to vector<16x128xf32>
    %27 = arith.addf %24, %26 : vector<16x128xf32>
    %28 = vector.shape_cast %27 : vector<16x128xf32> to vector<2x8x128xf32>
    %29 = vector.extract_strided_slice %18 {offsets = [0, 0, 0], sizes = [2, 8, 32], strides = [1, 1, 1]} : vector<2x8x128xf32> to vector<2x8x32xf32>
    %30 = vector.extract_strided_slice %18 {offsets = [0, 0, 32], sizes = [2, 8, 32], strides = [1, 1, 1]} : vector<2x8x128xf32> to vector<2x8x32xf32>
    %31 = vector.extract_strided_slice %18 {offsets = [0, 0, 64], sizes = [2, 8, 32], strides = [1, 1, 1]} : vector<2x8x128xf32> to vector<2x8x32xf32>
    %32 = vector.extract_strided_slice %18 {offsets = [0, 0, 96], sizes = [2, 8, 32], strides = [1, 1, 1]} : vector<2x8x128xf32> to vector<2x8x32xf32>
    %33 = tpu.concatenate %29, %30, %31, %32 in 0 : vector<2x8x32xf32>, vector<2x8x32xf32>, vector<2x8x32xf32>, vector<2x8x32xf32> -> vector<8x8x32xf32>
    %34 = vector.extract_strided_slice %23 {offsets = [0, 0, 0], sizes = [2, 8, 32], strides = [1, 1, 1]} : vector<2x8x128xf32> to vector<2x8x32xf32>
    %35 = vector.extract_strided_slice %23 {offsets = [0, 0, 32], sizes = [2, 8, 32], strides = [1, 1, 1]} : vector<2x8x128xf32> to vector<2x8x32xf32>
    %36 = vector.extract_strided_slice %23 {offsets = [0, 0, 64], sizes = [2, 8, 32], strides = [1, 1, 1]} : vector<2x8x128xf32> to vector<2x8x32xf32>
    %37 = vector.extract_strided_slice %23 {offsets = [0, 0, 96], sizes = [2, 8, 32], strides = [1, 1, 1]} : vector<2x8x128xf32> to vector<2x8x32xf32>
    %38 = tpu.concatenate %34, %35, %36, %37 in 0 : vector<2x8x32xf32>, vector<2x8x32xf32>, vector<2x8x32xf32>, vector<2x8x32xf32> -> vector<8x8x32xf32>
    %39 = vector.extract_strided_slice %28 {offsets = [0, 0, 0], sizes = [2, 8, 32], strides = [1, 1, 1]} : vector<2x8x128xf32> to vector<2x8x32xf32>
    %40 = vector.extract_strided_slice %28 {offsets = [0, 0, 32], sizes = [2, 8, 32], strides = [1, 1, 1]} : vector<2x8x128xf32> to vector<2x8x32xf32>
    %41 = vector.extract_strided_slice %28 {offsets = [0, 0, 64], sizes = [2, 8, 32], strides = [1, 1, 1]} : vector<2x8x128xf32> to vector<2x8x32xf32>
    %42 = vector.extract_strided_slice %28 {offsets = [0, 0, 96], sizes = [2, 8, 32], strides = [1, 1, 1]} : vector<2x8x128xf32> to vector<2x8x32xf32>
    %43 = tpu.concatenate %39, %40, %41, %42 in 0 : vector<2x8x32xf32>, vector<2x8x32xf32>, vector<2x8x32xf32>, vector<2x8x32xf32> -> vector<8x8x32xf32>
    %44 = arith.truncf %33 : vector<8x8x32xf32> to vector<8x8x32xbf16>
    %45 = arith.truncf %38 : vector<8x8x32xf32> to vector<8x8x32xbf16>
    "tpu.trace_start"() <{level = 10 : i32, message = "bqd,bkd->bqk"}> : () -> ()
    %cst_14 = arith.constant dense<0.000000e+00> : vector<8x8x8xf32>
    %46 = tpu.matmul %44, %45, %cst_14 {dimension_numbers = #tpu.dot_dimension_numbers<[2], [2], [1], [1], [0, 0, 0, 1, 1, 1], [0], [0]>} : vector<8x8x32xbf16>, vector<8x8x32xbf16>, vector<8x8x8xf32> -> vector<8x8x8xf32>
    "tpu.trace_stop"() : () -> ()
    %cst_15 = arith.constant 0.176776692 : f32
    %47 = vector.broadcast %cst_15 : f32 to vector<8x8x8xf32>
    %48 = arith.mulf %46, %47 : vector<8x8x8xf32>
    %49 = tpu.concatenate %9, %9, %9, %9 in 0 : vector<2x8xf32>, vector<2x8xf32>, vector<2x8xf32>, vector<2x8xf32> -> vector<8x8xf32>
    %50 = vector.shape_cast %49 : vector<8x8xf32> to vector<8x1x8xf32>
    %51 = vector.broadcast %50 : vector<8x1x8xf32> to vector<8x8x8xf32>
    %52 = arith.addf %48, %51 : vector<8x8x8xf32>
    %cst_16 = arith.constant dense<0xFF800000> : vector<8x8xf32>
    %53 = vector.multi_reduction <maximumf>, %52, %cst_16 [2] : vector<8x8x8xf32> to vector<8x8xf32>
    %54 = vector.shape_cast %53 : vector<8x8xf32> to vector<8x8x1xf32>
    %55 = vector.broadcast %54 : vector<8x8x1xf32> to vector<8x8x8xf32>
    %56 = arith.subf %52, %55 : vector<8x8x8xf32>
    %57 = math.exp %56 : vector<8x8x8xf32>
    %cst_17 = arith.constant dense<0.000000e+00> : vector<8x8xf32>
    %58 = vector.multi_reduction <add>, %57, %cst_17 [2] : vector<8x8x8xf32> to vector<8x8xf32>
    %59 = vector.shape_cast %58 : vector<8x8xf32> to vector<8x8x1xf32>
    %60 = tpu.reciprocal %59 {approx = true} : vector<8x8x1xf32> -> vector<8x8x1xf32>
    %61 = vector.broadcast %60 : vector<8x8x1xf32> to vector<8x8x8xf32>
    %62 = arith.mulf %57, %61 : vector<8x8x8xf32>
    %63 = arith.truncf %62 : vector<8x8x8xf32> to vector<8x8x8xbf16>
    %64 = arith.truncf %43 : vector<8x8x32xf32> to vector<8x8x32xbf16>
    "tpu.trace_start"() <{level = 10 : i32, message = "bqk,bkd->bqd"}> : () -> ()
    %cst_18 = arith.constant dense<0.000000e+00> : vector<8x8x32xf32>
    %65 = tpu.matmul %63, %64, %cst_18 {dimension_numbers = #tpu.dot_dimension_numbers<[2], [1], [1], [2], [0, 0, 0, 1, 1, 2], [0], [0]>} : vector<8x8x8xbf16>, vector<8x8x32xbf16>, vector<8x8x32xf32> -> vector<8x8x32xf32>
    "tpu.trace_stop"() : () -> ()
    %66 = vector.extract_strided_slice %65 {offsets = [0, 0, 0], sizes = [2, 8, 32], strides = [1, 1, 1]} : vector<8x8x32xf32> to vector<2x8x32xf32>
    %67 = vector.extract_strided_slice %65 {offsets = [2, 0, 0], sizes = [2, 8, 32], strides = [1, 1, 1]} : vector<8x8x32xf32> to vector<2x8x32xf32>
    %68 = vector.extract_strided_slice %65 {offsets = [4, 0, 0], sizes = [2, 8, 32], strides = [1, 1, 1]} : vector<8x8x32xf32> to vector<2x8x32xf32>
    %69 = vector.extract_strided_slice %65 {offsets = [6, 0, 0], sizes = [2, 8, 32], strides = [1, 1, 1]} : vector<8x8x32xf32> to vector<2x8x32xf32>
    %70 = tpu.concatenate %66, %67, %68, %69 in 2 : vector<2x8x32xf32>, vector<2x8x32xf32>, vector<2x8x32xf32>, vector<2x8x32xf32> -> vector<2x8x128xf32>
    %71 = vector.shape_cast %70 : vector<2x8x128xf32> to vector<16x128xf32>
    %72 = arith.truncf %71 : vector<16x128xf32> to vector<16x128xbf16>
    %c0_19 = arith.constant 0 : index
    %c0_20 = arith.constant 0 : index
    %c0_21 = arith.constant 0 : index
    %73 = vector.load %arg5[%c0_19, %c0_20, %c0_21] : memref<1x128x128xbf16, #tpu.memory_space<vmem>>, vector<1x128x128xbf16>
    %74 = vector.shape_cast %73 : vector<1x128x128xbf16> to vector<128x128xbf16>
    %cst_22 = arith.constant dense<0.000000e+00> : vector<16x128xf32>
    %75 = tpu.matmul %72, %74, %cst_22 {dimension_numbers = #tpu.dot_dimension_numbers<[1], [0], [0], [1], [0, 0, 1, 1], [], []>} : vector<16x128xbf16>, vector<128x128xbf16>, vector<16x128xf32> -> vector<16x128xf32>
    %76 = vector.extract_strided_slice %6 {offsets = [3, 0], sizes = [1, 128], strides = [1, 1]} : vector<16x128xf32> to vector<1x128xf32>
    %77 = vector.broadcast %76 : vector<1x128xf32> to vector<16x128xf32>
    %78 = arith.addf %75, %77 : vector<16x128xf32>
    %79 = arith.addf %4, %78 : vector<16x128xf32>
    %80 = vector.extract_strided_slice %6 {offsets = [5, 0], sizes = [1, 128], strides = [1, 1]} : vector<16x128xf32> to vector<1x128xf32>
    %81 = vector.extract_strided_slice %6 {offsets = [6, 0], sizes = [1, 128], strides = [1, 1]} : vector<16x128xf32> to vector<1x128xf32>
    %cst_23 = arith.constant dense<0.000000e+00> : vector<16xf32>
    %82 = vector.multi_reduction <add>, %79, %cst_23 [1] : vector<16x128xf32> to vector<16xf32>
    %83 = vector.shape_cast %82 : vector<16xf32> to vector<16x1xf32>
    %cst_24 = arith.constant 1.280000e+02 : f32
    %84 = vector.broadcast %cst_24 : f32 to vector<16x1xf32>
    %85 = arith.divf %83, %84 : vector<16x1xf32>
    %86 = vector.broadcast %85 : vector<16x1xf32> to vector<16x128xf32>
    %87 = arith.subf %79, %86 : vector<16x128xf32>
    %88 = arith.mulf %87, %87 : vector<16x128xf32>
    %cst_25 = arith.constant dense<0.000000e+00> : vector<16xf32>
    %89 = vector.multi_reduction <add>, %88, %cst_25 [1] : vector<16x128xf32> to vector<16xf32>
    %90 = vector.shape_cast %89 : vector<16xf32> to vector<16x1xf32>
    %cst_26 = arith.constant 1.280000e+02 : f32
    %91 = vector.broadcast %cst_26 : f32 to vector<16x1xf32>
    %92 = arith.divf %90, %91 : vector<16x1xf32>
    %cst_27 = arith.constant 9.99999996E-13 : f32
    %93 = vector.broadcast %cst_27 : f32 to vector<16x1xf32>
    %94 = arith.addf %92, %93 : vector<16x1xf32>
    %95 = math.rsqrt %94 : vector<16x1xf32>
    %96 = vector.broadcast %95 : vector<16x1xf32> to vector<16x128xf32>
    %97 = arith.mulf %87, %96 : vector<16x128xf32>
    %98 = vector.broadcast %80 : vector<1x128xf32> to vector<16x128xf32>
    %99 = arith.mulf %97, %98 : vector<16x128xf32>
    %100 = vector.broadcast %81 : vector<1x128xf32> to vector<16x128xf32>
    %101 = arith.addf %99, %100 : vector<16x128xf32>
    %102 = arith.truncf %101 : vector<16x128xf32> to vector<16x128xbf16>
    %c0_28 = arith.constant 0 : index
    %c0_29 = arith.constant 0 : index
    %c0_30 = arith.constant 0 : index
    %103 = vector.load %arg6[%c0_28, %c0_29, %c0_30] : memref<1x128x256xbf16, #tpu.memory_space<vmem>>, vector<1x128x256xbf16>
    %104 = vector.shape_cast %103 : vector<1x128x256xbf16> to vector<128x256xbf16>
    %cst_31 = arith.constant dense<0.000000e+00> : vector<16x256xf32>
    %105 = tpu.matmul %102, %104, %cst_31 {dimension_numbers = #tpu.dot_dimension_numbers<[1], [0], [0], [1], [0, 0, 1, 1], [], []>} : vector<16x128xbf16>, vector<128x256xbf16>, vector<16x256xf32> -> vector<16x256xf32>
    %106 = vector.extract_strided_slice %8 {offsets = [0, 0], sizes = [1, 256], strides = [1, 1]} : vector<8x256xf32> to vector<1x256xf32>
    %107 = vector.broadcast %106 : vector<1x256xf32> to vector<16x256xf32>
    %108 = arith.addf %105, %107 : vector<16x256xf32>
    %cst_32 = arith.constant 5.000000e-01 : f32
    %109 = vector.broadcast %cst_32 : f32 to vector<16x256xf32>
    %110 = arith.mulf %109, %108 : vector<16x256xf32>
    %cst_33 = arith.constant 4.471500e-02 : f32
    %111 = vector.broadcast %cst_33 : f32 to vector<16x256xf32>
    %112 = arith.mulf %111, %108 : vector<16x256xf32>
    %113 = arith.mulf %112, %108 : vector<16x256xf32>
    %114 = arith.mulf %113, %108 : vector<16x256xf32>
    %115 = arith.addf %108, %114 : vector<16x256xf32>
    %cst_34 = arith.constant 0.797884583 : f32
    %116 = vector.broadcast %cst_34 : f32 to vector<16x256xf32>
    %117 = arith.mulf %116, %115 : vector<16x256xf32>
    %118 = math.tanh %117 : vector<16x256xf32>
    %cst_35 = arith.constant 1.000000e+00 : f32
    %119 = vector.broadcast %cst_35 : f32 to vector<16x256xf32>
    %120 = arith.addf %119, %118 : vector<16x256xf32>
    %121 = arith.mulf %110, %120 : vector<16x256xf32>
    %122 = arith.truncf %121 : vector<16x256xf32> to vector<16x256xbf16>
    %c0_36 = arith.constant 0 : index
    %c0_37 = arith.constant 0 : index
    %c0_38 = arith.constant 0 : index
    %123 = vector.load %arg7[%c0_36, %c0_37, %c0_38] : memref<1x256x128xbf16, #tpu.memory_space<vmem>>, vector<1x256x128xbf16>
    %124 = vector.shape_cast %123 : vector<1x256x128xbf16> to vector<256x128xbf16>
    %cst_39 = arith.constant dense<0.000000e+00> : vector<16x128xf32>
    %125 = tpu.matmul %122, %124, %cst_39 {dimension_numbers = #tpu.dot_dimension_numbers<[1], [0], [0], [1], [0, 0, 1, 1], [], []>} : vector<16x256xbf16>, vector<256x128xbf16>, vector<16x128xf32> -> vector<16x128xf32>
    %126 = vector.extract_strided_slice %6 {offsets = [4, 0], sizes = [1, 128], strides = [1, 1]} : vector<16x128xf32> to vector<1x128xf32>
    %127 = vector.broadcast %126 : vector<1x128xf32> to vector<16x128xf32>
    %128 = arith.addf %125, %127 : vector<16x128xf32>
    %129 = arith.addf %101, %128 : vector<16x128xf32>
    %130 = vector.extract_strided_slice %6 {offsets = [7, 0], sizes = [1, 128], strides = [1, 1]} : vector<16x128xf32> to vector<1x128xf32>
    %131 = vector.extract_strided_slice %6 {offsets = [8, 0], sizes = [1, 128], strides = [1, 1]} : vector<16x128xf32> to vector<1x128xf32>
    %cst_40 = arith.constant dense<0.000000e+00> : vector<16xf32>
    %132 = vector.multi_reduction <add>, %129, %cst_40 [1] : vector<16x128xf32> to vector<16xf32>
    %133 = vector.shape_cast %132 : vector<16xf32> to vector<16x1xf32>
    %cst_41 = arith.constant 1.280000e+02 : f32
    %134 = vector.broadcast %cst_41 : f32 to vector<16x1xf32>
    %135 = arith.divf %133, %134 : vector<16x1xf32>
    %136 = vector.broadcast %135 : vector<16x1xf32> to vector<16x128xf32>
    %137 = arith.subf %129, %136 : vector<16x128xf32>
    %138 = arith.mulf %137, %137 : vector<16x128xf32>
    %cst_42 = arith.constant dense<0.000000e+00> : vector<16xf32>
    %139 = vector.multi_reduction <add>, %138, %cst_42 [1] : vector<16x128xf32> to vector<16xf32>
    %140 = vector.shape_cast %139 : vector<16xf32> to vector<16x1xf32>
    %cst_43 = arith.constant 1.280000e+02 : f32
    %141 = vector.broadcast %cst_43 : f32 to vector<16x1xf32>
    %142 = arith.divf %140, %141 : vector<16x1xf32>
    %cst_44 = arith.constant 9.99999996E-13 : f32
    %143 = vector.broadcast %cst_44 : f32 to vector<16x1xf32>
    %144 = arith.addf %142, %143 : vector<16x1xf32>
    %145 = math.rsqrt %144 : vector<16x1xf32>
    %146 = vector.broadcast %145 : vector<16x1xf32> to vector<16x128xf32>
    %147 = arith.mulf %137, %146 : vector<16x128xf32>
    %148 = vector.broadcast %130 : vector<1x128xf32> to vector<16x128xf32>
    %149 = arith.mulf %147, %148 : vector<16x128xf32>
    %150 = vector.broadcast %131 : vector<1x128xf32> to vector<16x128xf32>
    %151 = arith.addf %149, %150 : vector<16x128xf32>
    %152 = vector.shape_cast %151 : vector<16x128xf32> to vector<2x8x128xf32>
    %c0_45 = arith.constant 0 : index
    %c0_46 = arith.constant 0 : index
    %c0_47 = arith.constant 0 : index
    %153 = vector.load %arg11[%c0_45, %c0_46, %c0_47] : memref<2x8x128xf32, #tpu.memory_space<vmem>>, vector<2x8x128xf32>
    tpu.vector_store %arg11[%c0_45, %c0_46, %c0_47], %152 {strides = array<i32>} : memref<2x8x128xf32, #tpu.memory_space<vmem>>, vector<2x8x128xf32>,
    %c1_i32 = arith.constant 1 : i32
    %154 = arith.cmpi eq, %arg0, %c1_i32 : i32
    %155 = arith.extui %154 : i1 to i32
    %c0_i32_48 = arith.constant 0 : i32
    %156 = arith.cmpi ne, %155, %c0_i32_48 : i32
    scf.if %156 {
      %157 = vector.extract_strided_slice %152 {offsets = [0, 0, 0], sizes = [2, 1, 128], strides = [1, 1, 1]} : vector<2x8x128xf32> to vector<2x1x128xf32>
      %158 = vector.shape_cast %157 : vector<2x1x128xf32> to vector<2x128xf32>
      %159 = arith.truncf %158 : vector<2x128xf32> to vector<2x128xbf16>
      %c0_49 = arith.constant 0 : index
      %c0_50 = arith.constant 0 : index
      %160 = vector.load %arg10[%c0_49, %c0_50] : memref<128x128xbf16, #tpu.memory_space<vmem>>, vector<128x128xbf16>
      %cst_51 = arith.constant dense<0.000000e+00> : vector<2x128xf32>
      %161 = tpu.matmul %159, %160, %cst_51 {dimension_numbers = #tpu.dot_dimension_numbers<[1], [0], [0], [1], [0, 0, 1, 1], [], []>} : vector<2x128xbf16>, vector<128x128xbf16>, vector<2x128xf32> -> vector<2x128xf32>
      %c0_52 = arith.constant 0 : index
      %c0_53 = arith.constant 0 : index
      %162 = vector.load %arg3[%c0_52, %c0_53] : memref<8x128xf32, #tpu.memory_space<vmem>>, vector<8x128xf32>
      %163 = vector.extract_strided_slice %162 {offsets = [2, 0], sizes = [1, 128], strides = [1, 1]} : vector<8x128xf32> to vector<1x128xf32>
      %164 = vector.broadcast %163 : vector<1x128xf32> to vector<2x128xf32>
      %165 = arith.addf %161, %164 : vector<2x128xf32>
      %166 = math.tanh %165 : vector<2x128xf32>
      %c0_54 = arith.constant 0 : index
      %c0_55 = arith.constant 0 : index
      %167 = vector.load %arg12[%c0_54, %c0_55] : memref<2x128xf32, #tpu.memory_space<vmem>>, vector<2x128xf32>
      tpu.vector_store %arg12[%c0_54, %c0_55], %166 {strides = array<i32>} : memref<2x128xf32, #tpu.memory_space<vmem>>, vector<2x128xf32>,
    } else {
    }
    return
  }
  func.func @transform_0(%arg0: i32) -> (i32, i32, i32) {
    %c0_i32 = arith.constant 0 : i32
    %c0_i32_0 = arith.constant 0 : i32
    %c0_i32_1 = arith.constant 0 : i32
    %c0_i32_2 = arith.constant 0 : i32
    return %c0_i32, %c0_i32_0, %c0_i32_1 : i32, i32, i32
  }
  func.func @transform_1(%arg0: i32) -> (i32, i32) {
    %c0_i32 = arith.constant 0 : i32
    %c0_i32_0 = arith.constant 0 : i32
    %c0_i32_1 = arith.constant 0 : i32
    return %c0_i32, %c0_i32_0 : i32, i32
  }
  func.func @transform_2(%arg0: i32) -> (i32, i32) {
    %c0_i32 = arith.constant 0 : i32
    %c0_i32_0 = arith.constant 0 : i32
    %c0_i32_1 = arith.constant 0 : i32
    return %c0_i32, %c0_i32_0 : i32, i32
  }
  func.func @transform_3(%arg0: i32) -> (i32, i32, i32) {
    %c0_i32 = arith.constant 0 : i32
    %c0_i32_0 = arith.constant 0 : i32
    %c0_i32_1 = arith.constant 0 : i32
    return %arg0, %c0_i32, %c0_i32_0 : i32, i32, i32
  }
  func.func @transform_4(%arg0: i32) -> (i32, i32, i32) {
    %c0_i32 = arith.constant 0 : i32
    %c0_i32_0 = arith.constant 0 : i32
    %c0_i32_1 = arith.constant 0 : i32
    return %arg0, %c0_i32, %c0_i32_0 : i32, i32, i32
  }
  func.func @transform_5(%arg0: i32) -> (i32, i32, i32) {
    %c0_i32 = arith.constant 0 : i32
    %c0_i32_0 = arith.constant 0 : i32
    %c0_i32_1 = arith.constant 0 : i32
    return %arg0, %c0_i32, %c0_i32_0 : i32, i32, i32
  }
  func.func @transform_6(%arg0: i32) -> (i32, i32, i32) {
    %c0_i32 = arith.constant 0 : i32
    %c0_i32_0 = arith.constant 0 : i32
    %c0_i32_1 = arith.constant 0 : i32
    return %arg0, %c0_i32, %c0_i32_0 : i32, i32, i32
  }
  func.func @transform_7(%arg0: i32) -> (i32, i32, i32) {
    %c0_i32 = arith.constant 0 : i32
    %c0_i32_0 = arith.constant 0 : i32
    %c0_i32_1 = arith.constant 0 : i32
    return %arg0, %c0_i32, %c0_i32_0 : i32, i32, i32
  }
  func.func @transform_8(%arg0: i32) -> (i32, i32, i32) {
    %c0_i32 = arith.constant 0 : i32
    %c0_i32_0 = arith.constant 0 : i32
    %c0_i32_1 = arith.constant 0 : i32
    return %arg0, %c0_i32, %c0_i32_0 : i32, i32, i32
  }
  func.func @transform_9(%arg0: i32) -> (i32, i32) {
    %c0_i32 = arith.constant 0 : i32
    %c0_i32_0 = arith.constant 0 : i32
    %c0_i32_1 = arith.constant 0 : i32
    return %c0_i32, %c0_i32_0 : i32, i32
  }
  func.func @transform_10(%arg0: i32) -> (i32, i32, i32) {
    %c0_i32 = arith.constant 0 : i32
    %c0_i32_0 = arith.constant 0 : i32
    %c0_i32_1 = arith.constant 0 : i32
    %c0_i32_2 = arith.constant 0 : i32
    return %c0_i32, %c0_i32_0, %c0_i32_1 : i32, i32, i32
  }
  func.func @transform_11(%arg0: i32) -> (i32, i32) {
    %c0_i32 = arith.constant 0 : i32
    %c0_i32_0 = arith.constant 0 : i32
    %c0_i32_1 = arith.constant 0 : i32
    return %c0_i32, %c0_i32_0 : i32, i32
  }
}

</mosaic_0001>

<bundles_post_ra>
// kernel: bert_forward.1
= control target key start
LH: loop header
LB: loop body
LE: loop exit
PB: predicated region body
PF: predicated region fallthrough
CT: control target
= control target key end

     0   :  { %s4357_s0 = inlined_call_operand.vmem [shape: f32[2,8,128], index: 0, kind: input, shape index: {}]   ;;  %s4358_s1 = inlined_call_operand.vmem [shape: f32[2,8], index: 1, kind: input, shape index: {}]   ;;  %s4359_s2 = inlined_call_operand.vmem [shape: f32[8,128], index: 2, kind: input, shape index: {}]   ;;  %s4360_s3 = inlined_call_operand.hbm [shape: bf16[2,128,384], index: 3, kind: input, shape index: {}]   ;;  %s4361_s4 = inlined_call_operand.vmem [shape: bf16[2,128,128], index: 4, kind: input, shape index: {}]   ;;  %s4362_s5 = inlined_call_operand.hbm [shape: bf16[2,128,256], index: 5, kind: input, shape index: {}]   ;;  %s4363_s6 = inlined_call_operand.hbm [shape: bf16[2,256,128], index: 6, kind: input, shape index: {}]   ;;  %s4364_s7 = inlined_call_operand.vmem [shape: f32[2,16,128], index: 7, kind: input, shape index: {}]   ;;  %s4365_s8 = inlined_call_operand.hbm [shape: f32[2,8,256], index: 8, kind: input, shape index: {}]   ;;  %s4366_s9 = inlined_call_operand.vmem [shape: bf16[128,128], index: 9, kind: input, shape index: {}]   ;;  %s4367_s10 = inlined_call_operand.hbm [shape: f32[2,8,128], index: 10, kind: output, shape index: {0}]   ;;  %s4368_s11 = inlined_call_operand.hbm [shape: f32[2,128], index: 11, kind: output, shape index: {1}]  }
   0x1   :  { %4378 = sst [smem:[#allocation21_spill]] %s4362_s5 }
   0x2   :  { %4379 = sst [smem:[#allocation22_spill]] %s4367_s10 }
   0x3   :  { %4380 = sst [smem:[#allocation23_spill]] %s4368_s11 }
   0x4   :  { %17 = vsyncpa [#allocation3], 0 }
   0x5   :  { %19 = vsyncpa [#allocation3 + $0x1], 0 }
   0x6   :  { %20 = vsyncpa [#allocation6], 0 }
   0x7   :  { %22 = vsyncpa [#allocation6 + $0x1], 0 }
   0x8   :  { %23 = vsyncpa [#allocation9], 0 }
   0x9   :  { %25 = vsyncpa [#allocation9 + $0x1], 0 }
   0xa   :  { %26 = vsyncpa [#allocation4], 0 }
   0xb   :  { %27 = vsyncpa [#allocation12], 0  ;;  %s3726_s17 = smov 0   ;;  %s3728_s18 = smov 0  }
   0xc   :  { %s3730_s19 = smov 0   ;;  %s3732_s20 = smov 0  }
   0xd LB: > { %4381 = sst [smem:[#allocation18_spill]] %s3637_s19  ;;  %s3745_s21 = sadd.s32 4294967295, %s3641_s20   ;;  %s3641_s20 = sphi %s3732_s20, %s4396_s20   ;;  %s3637_s19 = sphi %s3730_s19, %s4398_s19   ;;  %s3633_s18 = sphi %s3728_s18, %s4400_s18   ;;  %s3629_s17 = sphi %s3726_s17, %s4399_s17  }
   0xe   : > { %s3748_s22 = sadd.s32 1, %s3641_s20   ;;  %s103_s24 = sadd.s32 1, %s3637_s19 }
   0xf   : > { %4382 = sst [smem:[#allocation19_spill]] %s3748_s22  ;;  %s100_s23 = ssub.s32 %s3641_s20, %s3748_s22 }
  0x10   : > { %p101_p0 = scmp.eq.s32.totalorder %s100_s23, 0  ;;  %p110_p1 = scmp.ne.s32.totalorder %s3637_s19, %s3633_s18 }
  0x11   : > { %p111_p2 = scmp.eq.s32.totalorder %s3641_s20, 0  ;;  %p116_p3 = scmp.ne.s32.totalorder %s3633_s18, %s3629_s17 }
  0x12   : > { %s3758_s25 = scalar_select %p101_p0, %s3637_s19, %s103_s24  }
  0x13   : > { %p112_p4 = por %p111_p2, %p110_p1  ;;  %p117_p5 = scmp.eq.s32.totalorder %s3745_s21, 0 }
  0x14   : > { %4383 = sst [smem:[#allocation20_spill]] %s3758_s25  ;;  %p3163_p6 = scmp.lt.s32.totalorder %s3641_s20, 2 }
  0x15   : > { %p3762_p7 = por %p117_p5, %p116_p3  ;;  %s3767_s27 = sand.u32 1, %s3637_s19  }
  0x16   : > { %p3769_p8 = pnand %p3163_p6, %p112_p4  ;;  %s374_s29 = sand.u32 1, %s3641_s20  }
  0x17   : > { %s4384_s26 = scalar_select %p3762_p7, 1, 0 }
  0x18   : > { %s4385_s28 = scalar_select %p3769_p8, 1, 0 }
  0x19   : > { %s4369_s30 = sshll.u32 %s3767_s27, 7  ;;  %s4370_s12 = sshll.u32 %s3641_s20, 11 }
  0x1a   : > { %s378_s13 = scalar_lea.vmem [#allocation5], %s4369_s30  ;;  %s4386_s5 = sld [smem:[#allocation21_spill]] }
  0x1b   : > { %s385_s14 = sshll.u32 %s378_s13, 4  ;;  %s3787_s23 = scalar_lea.sflag [#allocation6], %s374_s29  ;;  %s3785_s14 = int_to_ptr.vmem [resolvable:$true] %s385_s14 }
  0x1c   : > { %p3793_p10 = pneg %p3769_p8 }
  0x20   : > { %s3783_s17 = scalar_lea.hbm %s4386_s5, %s4370_s12  ;;  %s3424_s16 = scalar_lea.hbm %s4386_s5, 4096 }
  0x21   : > { %s3419_s24 = scalar_lea.hbm %s3783_s17, 2048  ;;  %p3425_p13 = scmp.lt.u32.totalorder %s3783_s17, %s4386_s5 }
  0x22   : > { %p3420_p9 = scmp.ne.s32.totalorder %s3783_s17, %s3419_s24  ;;  %p3426_p0 = scmp.lt.u32.totalorder %s3424_s16, %s3419_s24 }
  0x23   : > { %p3428_p2 = scmp.lt.u32.totalorder %s3419_s24, %s3783_s17 }
  0x24   : > { %p3422_p11 = pnand %p3793_p10, %p3420_p9  ;;  %p3427_p1 = por %p3426_p0, %p3425_p13 }
  0x26   : > { %p3423_p12 = pneg %p3422_p11  ;;  %p3429_p3 = por %p3428_p2, %p3427_p1 }
  0x28   : > { %p3430_p4 = pnand %p3429_p3, %p3423_p12 }
  0x2a   : > { %3433 = shalt.err (!%p3430_p4)
}
  0x2b   : > { %s3434_s29 = scalar_lea.vmem %s3785_s14, 2048  ;;  %s3643_s13 = smov [#allocation5]  }
  0x2c   : > { %p3435_p5 = scmp.ne.s32.totalorder %s3785_s14, %s3434_s29  ;;  %s3439_s15 = sshll.u32 %s3643_s13, 4  ;;  %s3440_s15 = int_to_ptr.vmem [resolvable:$false] %s3439_s15 }
  0x2d   : > { %s3441_s25 = scalar_lea.vmem %s3440_s15, 4096  ;;  %p3442_p11 = scmp.lt.s32.totalorder %s3785_s14, %s3440_s15 }
  0x2e   : > { %p3437_p6 = pnand %p3435_p5, %p3793_p10  ;;  %p3443_p7 = scmp.lt.s32.totalorder %s3441_s25, %s3434_s29 }
  0x30   : > { %p3438_p9 = pneg %p3437_p6  ;;  %p3444_p13 = por %p3443_p7, %p3442_p11 }
  0x32   : > { %p3445_p0 = pnand %p3444_p13, %p3438_p9 }
  0x34   : > { %3448 = shalt.err (!%p3445_p0)
}
  0x35   : > { %s3644_s12 = smov 128   ;;  %s3645_s24 = smov 8  }
  0x36   : > { %3156 = dma.hbm_to_vmem [thread:$0]  (!%p3769_p8), %s3783_s17, 2048, %s3785_s14, %s3787_s23, %s3644_s12, %s3644_s12, %s3645_s24  }
  0x37   : > { %s4388_s16 = sshll.u32 %s3641_s20, 11  ;;  %s4389_s25 = sshll.u32 %s3767_s27, 7 }
  0x38   : > { %s3822_s15 = scalar_lea.hbm %s4363_s6, %s4388_s16  ;;  %s399_s5 = scalar_lea.vmem [#allocation7], %s4389_s25 }
  0x39   : > { %s406_s19 = sshll.u32 %s399_s5, 4  ;;  %p2785_p7 = scmp.ge.s32.totalorder %s3641_s20, 1  ;;  %s3827_s19 = int_to_ptr.vmem [resolvable:$true] %s406_s19 }
  0x3a   : > { %p441_p12 = scmp.lt.s32.totalorder %s3641_s20, 3  ;;  %s3131_s22 = smul.u32 192, %s3767_s27 }
  0x3b   : > { %s3132_s14 = smul.u32 3072, %s3641_s20  ;;  %s346_s29 = scalar_lea.sflag [#allocation3], %s3767_s27 }
  0x3c   : > { %p3831_p1 = pnand %p2785_p7, %p441_p12  ;;  %s349_s5 = scalar_lea.vmem [#allocation2], %s3131_s22 }
  0x3d   : > { %s3839_s24 = scalar_lea.hbm %s4360_s3, %s3132_s14  ;;  %s356_s16 = sshll.u32 %s349_s5, 4  ;;  %s3841_s16 = int_to_ptr.vmem [resolvable:$true] %s356_s16 }
  0x3e   : > { %s4390_s11 = scalar_select %p3831_p1, 1, 0 }
  0x3f   : > { %s3449_s13 = scalar_lea.hbm %s3839_s24, 3072  ;;  %s3454_s17 = scalar_lea.hbm %s4360_s3, 6144 }
  0x40   : > { %p3450_p2 = scmp.ne.s32.totalorder %s3839_s24, %s3449_s13  ;;  %p3455_p5 = scmp.lt.u32.totalorder %s3839_s24, %s4360_s3 }
  0x41   : > { %p3456_p6 = scmp.lt.u32.totalorder %s3454_s17, %s3449_s13  ;;  %p3458_p11 = scmp.lt.u32.totalorder %s3449_s13, %s3839_s24 }
  0x42   : > { %p3452_p3 = pnand %p3450_p2, %p3793_p10 }
  0x43   : > { %p3457_p9 = por %p3456_p6, %p3455_p5 }
  0x44   : > { %p3453_p4 = pneg %p3452_p3 }
  0x45   : > { %p3459_p13 = por %p3458_p11, %p3457_p9 }
  0x47   : > { %p3460_p0 = pnand %p3459_p13, %p3453_p4 }
  0x49   : > { %3463 = shalt.err (!%p3460_p0)
}
  0x4a   : > { %s3464_s22 = scalar_lea.vmem %s3841_s16, 3072  ;;  %s3646_s10 = smov [#allocation2]  }
  0x4b   : > { %p3465_p7 = scmp.ne.s32.totalorder %s3841_s16, %s3464_s22  ;;  %s3469_s5 = sshll.u32 %s3646_s10, 4  ;;  %s3470_s5 = int_to_ptr.vmem [resolvable:$false] %s3469_s5 }
  0x4c   : > { %s3471_s25 = scalar_lea.vmem %s3470_s5, 6144  ;;  %p3472_p3 = scmp.lt.s32.totalorder %s3841_s16, %s3470_s5 }
  0x4d   : > { %p3467_p12 = pnand %p3465_p7, %p3793_p10  ;;  %p3473_p1 = scmp.lt.s32.totalorder %s3471_s25, %s3464_s22 }
  0x4f   : > { %p3468_p2 = pneg %p3467_p12  ;;  %p3474_p5 = por %p3473_p1, %p3472_p3 }
  0x51   : > { %p3475_p6 = pnand %p3474_p5, %p3468_p2 }
  0x53   : > { %3478 = shalt.err (!%p3475_p6)
}
  0x54   : > { %s3647_s13 = smov 192   ;;  %s3648_s17 = smov 12  }
  0x55   : > { %3153 = dma.hbm_to_vmem [thread:$0]  (!%p3769_p8), %s3839_s24, 3072, %s3841_s16, %s346_s29, %s3647_s13, %s3647_s13, %s3648_s17  }
  0x56   : > { %s3479_s14 = scalar_lea.hbm %s3822_s15, 2048  ;;  %s3484_s10 = scalar_lea.hbm %s4363_s6, 4096 }
  0x57   : > { %p3480_p4 = scmp.ne.s32.totalorder %s3822_s15, %s3479_s14  ;;  %p3485_p11 = scmp.lt.u32.totalorder %s3822_s15, %s4363_s6 }
  0x58   : > { %p3486_p13 = scmp.lt.u32.totalorder %s3484_s10, %s3479_s14  ;;  %p3488_p7 = scmp.lt.u32.totalorder %s3479_s14, %s3822_s15 }
  0x59   : > { %p3482_p1 = pnand %p3480_p4, %p3793_p10 }
  0x5a   : > { %p3487_p0 = por %p3486_p13, %p3485_p11 }
  0x5b   : > { %p3483_p9 = pneg %p3482_p1 }
  0x5c   : > { %p3489_p12 = por %p3488_p7, %p3487_p0 }
  0x5e   : > { %p3490_p2 = pnand %p3489_p12, %p3483_p9 }
  0x60   : > { %3493 = shalt.err (!%p3490_p2)
}
  0x61   : > { %s3494_s24 = scalar_lea.vmem %s3827_s19, 2048  ;;  %s3649_s16 = smov [#allocation7]  }
  0x62   : > { %p3495_p3 = scmp.ne.s32.totalorder %s3827_s19, %s3494_s24  ;;  %s3499_s29 = sshll.u32 %s3649_s16, 4  ;;  %s3500_s29 = int_to_ptr.vmem [resolvable:$false] %s3499_s29 }
  0x63   : > { %s3501_s13 = scalar_lea.vmem %s3500_s29, 4096  ;;  %p3502_p4 = scmp.lt.s32.totalorder %s3827_s19, %s3500_s29 }
  0x64   : > { %p3497_p5 = pnand %p3495_p3, %p3793_p10  ;;  %p3503_p1 = scmp.lt.s32.totalorder %s3501_s13, %s3494_s24 }
  0x66   : > { %p3498_p6 = pneg %p3497_p5  ;;  %p3504_p11 = por %p3503_p1, %p3502_p4 }
  0x68   : > { %p3505_p13 = pnand %p3504_p11, %p3498_p6 }
  0x6a   : > { %3508 = shalt.err (!%p3505_p13)
}
  0x6b   : > { %s3650_s17 = smov 64   ;;  %s3651_s14 = smov 4  }
  0x6c   : > { %3159 = dma.hbm_to_vmem [thread:$0]  (!%p3769_p8), %s3822_s15, 2048, %s3827_s19, %s3787_s23, %s3650_s17, %s3650_s17, %s3651_s14  }
  0x6d   : > { %s2782_s12 = sshll.u32 %s3767_s27, 4  ;;  %s2891_s22 = sshll.u32 %s3641_s20, 8 }
  0x6e   : > { %s3894_s25 = scalar_lea.hbm %s4365_s8, %s2891_s22  ;;  %s428_s24 = scalar_lea.vmem [#allocation8], %s2782_s12 }
  0x6f   : > { %s436_s16 = sshll.u32 %s428_s24, 4  ;;  %s425_s29 = scalar_lea.sflag [#allocation9], %s3767_s27  ;;  %s437_s16 = int_to_ptr.vmem [resolvable:$true] %s436_s16 }
  0x70   : > { %s3509_s13 = scalar_lea.hbm %s3894_s25, 256  ;;  %s3514_s23 = scalar_lea.hbm %s4365_s8, 512 }
  0x71   : > { %p3510_p9 = scmp.ne.s32.totalorder %s3894_s25, %s3509_s13  ;;  %p3515_p12 = scmp.lt.u32.totalorder %s3894_s25, %s4365_s8 }
  0x72   : > { %p3516_p2 = scmp.lt.u32.totalorder %s3514_s23, %s3509_s13  ;;  %p3518_p5 = scmp.lt.u32.totalorder %s3509_s13, %s3894_s25 }
  0x73   : > { %p3512_p0 = pnand %p3510_p9, %p3793_p10 }
  0x74   : > { %p3517_p3 = por %p3516_p2, %p3515_p12 }
  0x75   : > { %p3513_p7 = pneg %p3512_p0 }
  0x76   : > { %p3519_p6 = por %p3518_p5, %p3517_p3 }
  0x78   : > { %p3520_p4 = pnand %p3519_p6, %p3513_p7 }
  0x7a   : > { %3523 = shalt.err (!%p3520_p4)
}
  0x7b   : > { %s3524_s27 = scalar_lea.vmem %s437_s16, 256  ;;  %s3652_s14 = smov [#allocation8]  }
  0x7c   : > { %p3525_p1 = scmp.ne.s32.totalorder %s437_s16, %s3524_s27  ;;  %s3529_s12 = sshll.u32 %s3652_s14, 4  ;;  %s3530_s12 = int_to_ptr.vmem [resolvable:$false] %s3529_s12 }
  0x7d   : > { %s3531_s22 = scalar_lea.vmem %s3530_s12, 512  ;;  %p3532_p9 = scmp.lt.s32.totalorder %s437_s16, %s3530_s12 }
  0x7e   : > { %p3527_p11 = pnand %p3525_p1, %p3793_p10  ;;  %p3533_p0 = scmp.lt.s32.totalorder %s3531_s22, %s3524_s27 }
  0x80   : > { %p3528_p13 = pneg %p3527_p11  ;;  %p3534_p8 = por %p3533_p0, %p3532_p9 }
  0x82   : > { %p3535_p2 = pnand %p3534_p8, %p3528_p13 }
  0x84   : > { %3538 = shalt.err (!%p3535_p2)
}
  0x85   : > { %p4391_p12 = scmp.ne.s32.totalorder %s4385_s28, 0  ;;  %p4392_p7 = scmp.ne.s32.totalorder %s4390_s11, 0 }
  0x86   : > { %s447_s30 = sand.u32 (!%p4392_p7), 1, %s3633_s18   ;;  %p4393_p10 = scmp.ne.s32.totalorder (!%p4392_p7), %s4384_s26, 0 }
  0x87   : > { %3162 = dma.hbm_to_vmem [thread:$0]  (!%p4391_p12), %s3894_s25, 256, %s437_s16, %s425_s29  }
  0x88   : > { %445 = sbr.rel (%p4392_p7) target bundleno = 3384 (0xd38), region = 60  ;;  %s448_s5 = scalar_lea.sflag (!%p4392_p7), [#allocation3], %s447_s30 }
  0x89   : > { %s3133_s10 = smul.u32 (!%p4392_p7), 192, %s447_s30 }
  0x8b   : > { %s3917_s24 = scalar_lea.vmem (!%p4392_p7), [#allocation2], %s3133_s10 }
  0x8f   : > { %3608 = dma.done.wait (%p4393_p10), %s448_s5, 3072  }
  0x90   : > { %3610 = vsyncadd (%p4393_p10), %s448_s5, 4294964224  ;;  %s456_s28 = sand.u32 1, %s3745_s21   ;;  %s2786_s13 = sshll.u32 %s447_s30, 7 }
  0x91   : > { %s457_s25 = scalar_lea.sflag [#allocation6], %s456_s28  ;;  %s3924_s16 = scalar_lea.vmem [#allocation5], %s2786_s13 }
  0x92   : > { %3612 = dma.done.wait (%p4393_p10), %s457_s25, 4096  }
  0x93   : > { %3614 = vsyncadd (%p4393_p10), %s457_s25, 4294963200  ;;  %s2788_s11 = sshll.u32 %s447_s30, 4  ;;  %s3930_s29 = scalar_lea.vmem [#allocation7], %s2786_s13 }
  0x94   : > { %s475_s19 = scalar_lea.sflag [#allocation9], %s447_s30  ;;  %s3932_s20 = scalar_lea.vmem [#allocation8], %s2788_s11 }
  0x95   : > { %3616 = dma.done.wait (%p4393_p10), %s475_s19, 256  }
  0x96   : > { %3618 = vsyncadd (%p4393_p10), %s475_s19, 4294967040  ;;  %p537_p8 = scmp.lt.s32.totalorder %s3745_s21, 1  ;;  %p2793_p3 = scmp.ne.s32.totalorder %s3745_s21, 0 }
  0x97   : > { %v552_v0 = vld [vmem:[%s4357_s0] sm:$0xff] (!%p2793_p3)  ;;  %v553_v1 = vld [vmem:[%s4357_s0 + $0x8] sm:$0xff] (!%p2793_p3)  ;;  %v578_v12 = vlaneseq (!%p2793_p3) }
  0x98   : > { %s538_s23 = scalar_select %p537_p8, %s3745_s21, 1 }
  0x99   : > { %551 = sbr.rel (%p2793_p3) target bundleno = 469 (0x1d5), region = 80  ;;  %555 = vadd.xlane.f32.xlu0 (!%p2793_p3), %v552_v0  ;;  %v579_v16 = vshrl.u32 (!%p2793_p3), %v578_v12, 7  ;;  %v554_v19 = vld [vmem:[%s4359_s2] sm:$0xff] (!%p2793_p3) }
  0x9a   : > { %s2892_s15 = sshll.u32 %s538_s23, 6  ;;  %s2893_s17 = sshll.u32 %s538_s23, 4 }
  0x9b   : > { %s3943_s12 = scalar_lea.vmem %s4361_s4, %s2892_s15  ;;  %s3948_s10 = scalar_lea.vmem %s4364_s7, %s2893_s17  ;;  %v580_v18 = vsub.s32 (!%p2793_p3), 0, %v579_v16  ;;  %v586_v20 = vsub.s32 (!%p2793_p3), 1, %v579_v16 }
  0x9d   : > { %557 = vadd.xlane.f32.xlu0 (!%p2793_p3), %v553_v1  ;;  %v581_v21 = vrot.slane (!%p2793_p3), %v554_v19, %v580_v18  ;;  %v587_v23 = vrot.slane (!%p2793_p3), %v554_v19, %v586_v20 }
 0x126   : > { %v556_v2 = vpop.xlane.xlu0 %555 }
 0x127   : > { %v560_v3 = vmul.f32 0.0078125, %v556_v2 }
 0x129   : > { %v562_v4 = vsub.f32 %v552_v0, %v560_v3 }
 0x12a   : > { %v558_v5 = vpop.xlane.xlu0 %557 }
 0x12b   : > { %v561_v6 = vmul.f32 0.0078125, %v558_v5  ;;  %v564_v7 = vmul.f32 %v562_v4, %v562_v4 }
 0x12d   : > { %v563_v8 = vsub.f32 %v553_v1, %v561_v6  ;;  %566 = vadd.xlane.f32.xlu1 %v564_v7 }
 0x12f   : > { %v565_v9 = vmul.f32 %v563_v8, %v563_v8 }
 0x131   : > { %568 = vadd.xlane.f32.xlu1 %v565_v9 }
 0x1ba   : > { %v567_v10 = vpop.xlane.xlu1 %566 }
 0x1bb   : > { %v570_v11 = vmul.f32 0.0078125, %v567_v10 }
 0x1bd   : > { %v572_v13 = vadd.f32 1e-12, %v570_v11 }
 0x1be   : > { %v569_v14 = vpop.xlane.xlu1 %568 }
 0x1bf   : > { %3219 = vrsqrt.f32 %v572_v13  ;;  %v571_v15 = vmul.f32 0.0078125, %v569_v14 }
 0x1c1   : > { %v573_v17 = vadd.f32 1e-12, %v571_v15 }
 0x1c3   : > { %3221 = vrsqrt.f32 %v573_v17 }
 0x1c9   : > { %v3220_v22 = vpop.eup %3219 }
 0x1ca   : > { %v576_v24 = vmul.f32 %v3220_v22, %v562_v4 }
 0x1cc   : > { %v582_v25 = vmul.f32 %v581_v21, %v576_v24 }
 0x1cd   : > { %v3222_v26 = vpop.eup %3221 }
 0x1ce   : > { %v588_v27 = vadd.f32 %v587_v23, %v582_v25  ;;  %v577_v28 = vmul.f32 %v3222_v26, %v563_v8 }
 0x1d0   : > { %590 = vst [vmem:[#allocation10] sm:$0xff] %v588_v27  ;;  %v583_v29 = vmul.f32 %v581_v21, %v577_v28 }
 0x1d2   : > { %v589_v30 = vadd.f32 %v587_v23, %v583_v29 }
 0x1d4   : > { %591 = vst [vmem:[#allocation10 + $0x8] sm:$0xff] %v589_v30 }
 0x1d5 PF: > { %v3278_v31 = vld [vmem:[%s3917_s24 + $0x4] ss:$12 sps:$4 sm:$0xff]   ;;  %v3280_v32 = vld [vmem:[%s3917_s24] ss:$12 sps:$4 sm:$0xff]   ;;  %v3653_v33 = vmov 0   ;;  %v3654_v34 = vmov 0.0   ;;  %v844_v60 = vlaneseq }
 0x1d6   : > { %792 = vmatprep.mubr.bf16.mxu0 %v3653_v33  ;;  %2975 = vmatprep.subr.bf16.mxu1 %v3654_v34  ;;  %v3281_v35 = vld [vmem:[%s3917_s24 + $0x1c] ss:$12 sps:$4 sm:$0xff]   ;;  %v3283_v36 = vld [vmem:[%s3917_s24 + $0x18] ss:$12 sps:$4 sm:$0xff]   ;;  %v3284_v37 = vld [vmem:[%s3917_s24 + $0x34] ss:$12 sps:$4 sm:$0xff]  }
 0x1d7   : > { %760 = vmatprep.subr.bf16.mxu0 %v3278_v31  ;;  %v3286_v38 = vld [vmem:[%s3917_s24 + $0x30] ss:$12 sps:$4 sm:$0xff]   ;;  %v3287_v39 = vld [vmem:[%s3917_s24 + $0x4c] ss:$12 sps:$4 sm:$0xff]   ;;  %v3289_v40 = vld [vmem:[%s3917_s24 + $0x48] ss:$12 sps:$4 sm:$0xff]  }
 0x1d8   : > { %761 = vmatpush1.bf16.msra.mxu0 %v3280_v32  ;;  %v3290_v41 = vld [vmem:[%s3917_s24 + $0x64] ss:$12 sps:$4 sm:$0xff]   ;;  %v3302_v42 = vld [vmem:[%s3917_s24 + $0x8] ss:$12 sps:$4 sm:$0xff]   ;;  %v3303_v43 = vld [vmem:[%s3917_s24 + $0x20] ss:$12 sps:$4 sm:$0xff]  }
 0x1d9   : > { %762 = vmatprep.subr.bf16.mxu0 %v3281_v35  ;;  %2976 = vmatpush3.bf16.msra.mxu1 %v3302_v42  ;;  %v3292_v44 = vld [vmem:[%s3917_s24 + $0x60] ss:$12 sps:$4 sm:$0xff]   ;;  %v3293_v45 = vld [vmem:[%s3917_s24 + $0x7c] ss:$12 sps:$4 sm:$0xff]   ;;  %v3304_v46 = vld [vmem:[%s3917_s24 + $0x38] ss:$12 sps:$4 sm:$0xff]  }
 0x1da   : > { %2977 = vmatprep.subr.bf16.mxu1 %v3654_v34  ;;  %v3295_v47 = vld [vmem:[%s3917_s24 + $0x78] ss:$12 sps:$4 sm:$0xff]   ;;  %v3296_v48 = vld [vmem:[%s3917_s24 + $0x94] ss:$12 sps:$4 sm:$0xff]   ;;  %v3305_v49 = vld [vmem:[%s3917_s24 + $0x50] ss:$12 sps:$4 sm:$0xff]  }
 0x1db   : > { %v3298_v50 = vld [vmem:[%s3917_s24 + $0x90] ss:$12 sps:$4 sm:$0xff]   ;;  %v3299_v51 = vld [vmem:[%s3917_s24 + $0xac] ss:$12 sps:$4 sm:$0xff]   ;;  %v3306_v52 = vld [vmem:[%s3917_s24 + $0x68] ss:$12 sps:$4 sm:$0xff]  }
 0x1dc   : > { %763 = vmatpush1.bf16.msra.mxu0 %v3283_v36  ;;  %v3301_v53 = vld [vmem:[%s3917_s24 + $0xa8] ss:$12 sps:$4 sm:$0xff]   ;;  %v592_v54 = vld [vmem:[#allocation10] sm:$0xff]  ;;  %v3309_v59 = vld [vmem:[%s3917_s24 + $0xb0] ss:$12 sps:$4 sm:$0xff]   ;;  %vm3655_vm0 = vmmov 0  }
 0x1dd   : > { %764 = vmatprep.subr.bf16.mxu0 %v3284_v37  ;;  %2978 = vmatpush3.bf16.msra.mxu1 %v3303_v43  ;;  %v593_v55 = vld [vmem:[#allocation10 + $0x8] sm:$0xff]  ;;  %v3308_v58 = vld [vmem:[%s3917_s24 + $0x98] ss:$12 sps:$4 sm:$0xff]   ;;  %v4001_v61 = vshrl.u32 %v844_v60, 7  ;;  %vm938_vm1 = vcmask 261120   ;;  %s3657_s19 = smov 64  }
 0x1de   : > { %2979 = vmatprep.subr.bf16.mxu1 %v3654_v34  ;;  %v3307_v56 = vld [vmem:[%s3917_s24 + $0x80] ss:$12 sps:$4 sm:$0xff]   ;;  %v599_v57 = vpack.c.bf16 %v593_v55, %v592_v54  ;;  %2991 = vmatprep.mubr.msk.bf16.mxu1 %vm3655_vm0, %v3654_v34  ;;  %s3656_s24 = smov 96   ;;  %s3658_s23 = smov 32   ;;  %vm1324_vm2 = vcmask 1043456   ;;  %vm1322_vm3 = vcmask 1041408  }
 0x1df   : > { %v852_v62 = vsub.s32 1, %v4001_v61  ;;  %v4005_v63 = vld [vmem:[%s3948_s10] sm:$0xff]  ;;  %v4008_v0 = vsub.s32 0, %v4001_v61  ;;  %v858_v37 = vsub.s32 2, %v4001_v61  ;;  %vm1326_vm4 = vcmask 1045504   ;;  %p2874_p5 = scmp.ne.s32.totalorder %s3745_s21, 1 }
 0x1e0   : > { %765 = vmatpush1.bf16.msra.mxu0 %v3286_v38  ;;  %vm1426_vm5 = vcmask 64512   ;;  %vm1925_vm6 = vcmask 523264   ;;  %vm1928_vm7 = vcmask 785408   ;;  %vm3661_vm8 = vmmov (!%p2874_p5), 0  }
 0x1e1   : > { %766 = vmatprep.subr.bf16.mxu0 %v3287_v39  ;;  %2980 = vmatpush3.bf16.msra.mxu1 %v3304_v46  ;;  %v853_v1 = vrot.slane %v4005_v63, %v852_v62  ;;  %v847_v2 = vrot.slane %v4005_v63, %v4008_v0  ;;  %v859_v46 = vrot.slane %v4005_v63, %v858_v37  ;;  %vm2507_vm9 = vcmask (!%p2874_p5), 1041409  }
 0x1e2   : > { %2981 = vmatprep.subr.bf16.mxu1 %v3654_v34 }
 0x1e4   : > { %767 = vmatpush1.bf16.msra.mxu0 %v3289_v40 }
 0x1e5   : > { %768 = vmatprep.subr.bf16.mxu0 %v3290_v41  ;;  %2982 = vmatpush3.bf16.msra.mxu1 %v3305_v49 }
 0x1e6   : > { %2983 = vmatprep.subr.bf16.mxu1 %v3654_v34 }
 0x1e8   : > { %769 = vmatpush1.bf16.msra.mxu0 %v3292_v44 }
 0x1e9   : > { %770 = vmatprep.subr.bf16.mxu0 %v3293_v45  ;;  %2984 = vmatpush3.bf16.msra.mxu1 %v3306_v52 }
 0x1ea   : > { %2985 = vmatprep.subr.bf16.mxu1 %v3654_v34 }
 0x1ec   : > { %771 = vmatpush1.bf16.msra.mxu0 %v3295_v47 }
 0x1ed   : > { %772 = vmatprep.subr.bf16.mxu0 %v3296_v48  ;;  %2986 = vmatpush3.bf16.msra.mxu1 %v3307_v56 }
 0x1ee   : > { %2987 = vmatprep.subr.bf16.mxu1 %v3654_v34 }
 0x1f0   : > { %773 = vmatpush1.bf16.msra.mxu0 %v3298_v50 }
 0x1f1   : > { %774 = vmatprep.subr.bf16.mxu0 %v3299_v51  ;;  %2988 = vmatpush3.bf16.msra.mxu1 %v3308_v58 }
 0x1f2   : > { %2989 = vmatprep.subr.bf16.mxu1 %v3654_v34 }
 0x1f4   : > { %775 = vmatpush1.bf16.msra.mxu0 %v3301_v53 }
 0x1f5   : > { %3019 = vmatprep.subr.bf16.mxu0 %v3654_v34  ;;  %2990 = vmatpush3.bf16.msra.mxu1 %v3309_v59 }
 0x1f6   : > { %2995 = vmatprep.subr.bf16.mxu1 %v3654_v34 }
 0x1f7   : > { %793 = vmatmul.mubr.bf16.vlgmr.msra.gmra.mrb[0].mxu0 %v599_v57 }
 0x1f8   : > { %3021 = vmatprep.mubr.msk.bf16.mxu0 %vm3655_vm0, %v3654_v34  ;;  %2992 = vmatmul.mubr.bf16.vlgmr.msra.gmra.mrb[0].mxu1 %v599_v57 }
 0x1f9   : > { %2997 = vmatprep.mubr.msk.bf16.mxu1 %vm3655_vm0, %v3654_v34 }
 0x2ca   : > { %v794_v3 = vpop.f32.mrb[0].mxu0 }
 0x2cb   : > { %v796_v4 = vpop.f32.mrb[1].mxu0  ;;  %v848_v7 = vadd.f32 %v847_v2, %v794_v3  ;;  %v837_v20 = vpop.f32.mrb[0].mxu1 }
 0x2cc   : > { %v854_v5 = vadd.f32 %v853_v1, %v796_v4  ;;  %v798_v6 = vpop.f32.mrb[2].mxu0  ;;  %v2993_v21 = vpop.f32.mrb[1].mxu1  ;;  %v4043_v50 = vadd.f32 %v859_v46, %v837_v20 }
 0x2cd   : > { %v849_v8 = vadd.f32 %v847_v2, %v798_v6  ;;  %v800_v9 = vpop.f32.mrb[3].mxu0  ;;  %v922_v17 = vpack.c.bf16 %v848_v7, %v848_v7  ;;  %v840_v22 = vpop.f32.mrb[2].mxu1 }
 0x2ce   : > { %v855_v10 = vadd.f32 %v853_v1, %v800_v9  ;;  %884 = vrot.lane.b32.xlu0 %v854_v5, %s3656_s24  ;;  %v930_v11 = vpack.c.bf16 %v854_v5, %v854_v5  ;;  %v2994_v23 = vpop.f32.mrb[3].mxu1  ;;  %v1523_v57 = vpack.c.bf16 %v4043_v50, %v4043_v50  ;;  %v4058_v2 = vadd.f32 %v859_v46, %v840_v22 }
 0x2cf   : > { %866 = vrot.lane.b32.xlu1 %v849_v8, %s3656_s24  ;;  %v3233_v12 = vpack.i.bf16 %v849_v8, %v848_v7  ;;  %v923_v19 = vpack.c.bf16 %v849_v8, %v849_v8  ;;  %v598_v8 = vld [vmem:[%s4358_s1] sm:$0x3] }
 0x2d0   : > { %v943_v13 = vsel %vm938_vm1, %v930_v11, 0  ;;  %v3223_v14 = vpack.i.bf16 %v855_v10, %v848_v7  ;;  %v3228_v15 = vpack.i.bf16 %v855_v10, %v854_v5  ;;  %v931_v16 = vpack.c.bf16 %v855_v10, %v855_v10 }
 0x2d1   : > { %2996 = vmatpush3.bf16.xpose.msra.mxu1 %v943_v13  ;;  %v1535_v62 = vsel %vm1324_vm2, %v1523_v57, 0  ;;  %v1524_v5 = vpack.c.bf16 %v4058_v2, %v4058_v2  ;;  %v1316_v9 = vrot.slane %v598_v8, 6  ;;  %v3659_v10 = vmov 1966171168  }
 0x2d2   : > { %3224 = vrot.lane.b32.xlu0 %v3223_v14, %s3656_s24  ;;  %3001 = vmatprep.subr.bf16.mxu1 %v3654_v34  ;;  %v989_v18 = vsel %vm938_vm1, %v931_v16, 0  ;;  %v1331_v11 = vunpack.c.l.s4 %v3659_v10 }
 0x2d3   : > { %3229 = vrot.lane.b32.xlu1 %v3228_v15, %s3657_s19  ;;  %v1581_v7 = vsel %vm1324_vm2, %v1524_v5, 0  ;;  %v1323_v13 = vsel %vm1322_vm3, %v598_v8, %v1316_v9 }
 0x2d4   : > { %v1332_v14 = vunpack.c.0.s8 %v1331_v11 }
 0x2d6   : > { %3234 = vrot.lane.b32.xlu0 %v3233_v12, %s3657_s19 }
 0x2d7   : > { %3239 = vrot.lane.b32.xlu1 %v3228_v15, %s3658_s23  ;;  %v1320_v15 = vrot.slane %v598_v8, 2 }
 0x2d8   : > { %2998 = vmatmul.mubr.msk.bf16.vlgmr.msra.gmra.mrb[4].mxu1 %vm938_vm1, %v922_v17  ;;  %v1335_v17 = vsub.s32 %v1332_v14, %v4001_v61 }
 0x2d9   : > { %3002 = vmatpush3.bf16.xpose.msra.mxu1 %v989_v18  ;;  %3003 = vmatprep.mubr.msk.bf16.mxu1 %vm3655_vm0, %v3654_v34 }
 0x2da   : > { %3244 = vrot.lane.b32.xlu0 %v3233_v12, %s3658_s23  ;;  %3007 = vmatprep.subr.bf16.mxu1 %v3654_v34  ;;  %v1318_v12 = vrot.slane %v598_v8, 4 }
 0x2dc   : > { %v1325_v16 = vsel %vm1324_vm2, %v1323_v13, %v1318_v12 }
 0x2dd   : > { %v1327_v18 = vsel %vm1326_vm4, %v1325_v16, %v1320_v15 }
 0x2e0   : > { %3004 = vmatmul.mubr.msk.bf16.vlgmr.msra.gmra.mrb[8].mxu1 %vm938_vm1, %v923_v19  ;;  %v1336_v19 = vrot.slane %v1327_v18, %v1335_v17 }
 0x2e1   : > { %3009 = vmatprep.mubr.msk.bf16.mxu1 %vm3655_vm0, %v3654_v34 }
 0x2e2   : > { %v1352_v20 = vrot.slane %v1336_v19, %v1335_v17  ;;  %v1344_v22 = vcombine.high %v1336_v19, %v1336_v19 }
 0x2e4   : > { %v1381_v21 = vrot.slane %v1352_v20, %v4008_v0 }
 0x340   : > { %v885_v24 = vpop.permute.xlu0 %884 }
 0x341   : > { %v932_v25 = vpack.c.bf16 %v885_v24, %v885_v24  ;;  %v867_v26 = vpop.permute.xlu1 %866 }
 0x342   : > { %v925_v51 = vpack.c.bf16 %v867_v26, %v867_v26 }
 0x343   : > { %v1035_v27 = vsel %vm938_vm1, %v932_v25, 0 }
 0x344   : > { %v3225_v28 = vpop.permute.xlu0 %3224  ;;  %3008 = vmatpush3.bf16.xpose.msra.mxu1 %v1035_v27 }
 0x345   : > { %v3227_v29 = vunpack.i.h.bf16 %v3225_v28  ;;  %v3226_v30 = vunpack.i.l.bf16 %v3225_v28  ;;  %v3230_v31 = vpop.permute.xlu1 %3229  ;;  %3013 = vmatprep.subr.bf16.mxu1 %v3654_v34 }
 0x346   : > { %v3231_v32 = vunpack.i.l.bf16 %v3230_v31  ;;  %v3232_v43 = vunpack.i.h.bf16 %v3230_v31 }
 0x347   : > { %v933_v35 = vpack.c.bf16 %v3227_v29, %v3227_v29  ;;  %v924_v38 = vpack.c.bf16 %v3226_v30, %v3226_v30  ;;  %v1366_v29 = vrot.slane %v1344_v22, %v1335_v17 }
 0x348   : > { %v934_v36 = vpack.c.bf16 %v3231_v32, %v3231_v32  ;;  %v3235_v39 = vpop.permute.xlu0 %3234  ;;  %v935_v48 = vpack.c.bf16 %v3232_v43, %v3232_v43  ;;  %v1374_v43 = vcombine.high %v1352_v20, %v1352_v20 }
 0x349   : > { %v3240_v40 = vpop.permute.xlu1 %3239  ;;  %v1081_v44 = vsel %vm938_vm1, %v933_v35, 0  ;;  %v3236_v45 = vunpack.i.l.bf16 %v3235_v39  ;;  %v3237_v58 = vunpack.i.h.bf16 %v3235_v39  ;;  %v1385_v31 = vrot.slane %v1366_v29, %v4008_v0 }
 0x34a   : > { %v3241_v41 = vunpack.i.l.bf16 %v3240_v40  ;;  %v1127_v42 = vsel %vm938_vm1, %v934_v36, 0  ;;  %v3242_v54 = vunpack.i.h.bf16 %v3240_v40  ;;  %v1173_v55 = vsel %vm938_vm1, %v935_v48, 0 }
 0x34b   : > { %3010 = vmatmul.mubr.msk.bf16.vlgmr.msra.gmra.mrb[12].mxu1 %vm938_vm1, %v924_v38  ;;  %3020 = vmatpush3.bf16.xpose.msra.mxu0 %v1127_v42  ;;  %v926_v49 = vpack.c.bf16 %v3236_v45, %v3236_v45  ;;  %v927_v1 = vpack.c.bf16 %v3237_v58, %v3237_v58  ;;  %v1329_v42 = vcombine.high %v1327_v18, %v1327_v18 }
 0x34c   : > { %3014 = vmatpush3.bf16.xpose.msra.mxu1 %v1081_v44  ;;  %3015 = vmatprep.mubr.msk.bf16.mxu1 %vm3655_vm0, %v3654_v34  ;;  %v936_v47 = vpack.c.bf16 %v3241_v41, %v3241_v41  ;;  %v3245_v52 = vpop.permute.xlu0 %3244  ;;  %v937_v59 = vpack.c.bf16 %v3242_v54, %v3242_v54  ;;  %v1389_v45 = vrot.slane %v1374_v43, %v4008_v0 }
 0x34d   : > { %3031 = vmatprep.subr.bf16.mxu0 %v3654_v34  ;;  %3025 = vmatprep.subr.bf16.mxu1 %v3654_v34  ;;  %v3246_v56 = vunpack.i.l.bf16 %v3245_v52  ;;  %v3247_v4 = vunpack.i.h.bf16 %v3245_v52  ;;  %v1343_v44 = vrot.slane %v1329_v42, %v1335_v17  ;;  %v1376_v54 = vcombine.high %v1366_v29, %v1366_v29 }
 0x34e   : > { %v1219_v53 = vsel %vm938_vm1, %v936_v47, 0  ;;  %v1265_v3 = vsel %vm938_vm1, %v937_v59, 0 }
 0x34f   : > { %v928_v60 = vpack.c.bf16 %v3246_v56, %v3246_v56  ;;  %v929_v6 = vpack.c.bf16 %v3247_v4, %v3247_v4  ;;  %v1393_v58 = vrot.slane %v1376_v54, %v4008_v0  ;;  %v1345_v59 = vcombine.high %v1343_v44, %v1343_v44 }
 0x351   : > { %v1373_v12 = vrot.slane %v1345_v59, %v1335_v17 }
 0x352   : > { %3022 = vmatmul.mubr.msk.bf16.vlgmr.msra.gmra.mrb[4].mxu0 %vm938_vm1, %v926_v49 }
 0x353   : > { %3016 = vmatmul.mubr.msk.bf16.vlgmr.msra.gmra.mrb[16].mxu1 %vm938_vm1, %v925_v51  ;;  %3032 = vmatpush3.bf16.xpose.msra.mxu0 %v1219_v53  ;;  %v1359_v51 = vrot.slane %v1343_v44, %v1335_v17  ;;  %v1401_v18 = vrot.slane %v1373_v12, %v4008_v0 }
 0x354   : > { %3026 = vmatpush3.bf16.xpose.msra.mxu1 %v1173_v55  ;;  %3033 = vmatprep.mubr.msk.bf16.mxu0 %vm3655_vm0, %v3654_v34 }
 0x355   : > { %3027 = vmatprep.mubr.msk.bf16.mxu1 %vm3655_vm0, %v3654_v34  ;;  %3037 = vmatprep.subr.bf16.mxu1 %v3654_v34  ;;  %v1397_v56 = vrot.slane %v1359_v51, %v4008_v0  ;;  %v1375_v9 = vcombine.high %v1359_v51, %v1359_v51 }
 0x356   : > { %3043 = vmatprep.subr.bf16.mxu0 %v3654_v34 }
 0x357   : > { %v1405_v15 = vrot.slane %v1375_v9, %v4008_v0 }
 0x35a   : > { %3034 = vmatmul.mubr.msk.bf16.vlgmr.msra.gmra.mrb[8].mxu0 %vm938_vm1, %v928_v60 }
 0x35b   : > { %3028 = vmatmul.mubr.msk.bf16.vlgmr.msra.gmra.mrb[20].mxu1 %vm938_vm1, %v927_v1  ;;  %3044 = vmatpush3.bf16.msra.mxu0 %v1535_v62 }
 0x35c   : > { %3038 = vmatpush3.bf16.xpose.msra.mxu1 %v1265_v3  ;;  %3039 = vmatprep.mubr.msk.bf16.mxu1 %vm3655_vm0, %v3654_v34 }
 0x35d   : > { %3049 = vmatprep.subr.bf16.mxu1 %v3654_v34  ;;  %3045 = vmatprep.mubr.msk.bf16.mxu0 %vm3655_vm0, %v3654_v34 }
 0x35e   : > { %3055 = vmatprep.subr.bf16.mxu0 %v3654_v34 }
 0x363   : > { %3040 = vmatmul.mubr.msk.bf16.vlgmr.msra.gmra.mrb[24].mxu1 %vm938_vm1, %v929_v6 }
 0x364   : > { %3050 = vmatpush3.bf16.msra.mxu1 %v1581_v7  ;;  %3051 = vmatprep.mubr.msk.bf16.mxu1 %vm3655_vm0, %v3654_v34 }
 0x365   : > { %3061 = vmatprep.subr.bf16.mxu1 %v3654_v34 }
 0x3ab   : > { %v979_v23 = vpop.f32.mrb[4].mxu1 }
 0x3ac   : > { %v1307_v24 = vmul.f32 0.17677669, %v979_v23  ;;  %v2999_v25 = vpop.f32.mrb[5].mxu1 }
 0x3ad   : > { %v982_v26 = vpop.f32.mrb[6].mxu1 }
 0x3ae   : > { %v3000_v27 = vpop.f32.mrb[7].mxu1  ;;  %v4082_v28 = vadd.f32 %v1381_v21, %v1307_v24 }
 0x3b0   : > { %v1427_v30 = vsel %vm1426_vm5, %v4082_v28, -inf }
 0x3b1   : > { %1428 = vmax.xlane.f32.xlu1 %v1427_v30  ;;  %v1377_v30 = vcombine.high %v1373_v12, %v1373_v12 }
 0x3b3   : > { %v1025_v32 = vpop.f32.mrb[8].mxu1 }
 0x3b4   : > { %v1308_v35 = vmul.f32 0.17677669, %v1025_v32  ;;  %v3005_v36 = vpop.f32.mrb[9].mxu1 }
 0x3b5   : > { %v1028_v38 = vpop.f32.mrb[10].mxu1 }
 0x3b6   : > { %v3006_v39 = vpop.f32.mrb[11].mxu1  ;;  %v4087_v40 = vadd.f32 %v1385_v31, %v1308_v35  ;;  %v1409_v35 = vrot.slane %v1377_v30, %v4008_v0 }
 0x3b8   : > { %v1430_v41 = vsel %vm1426_vm5, %v4087_v40, -inf }
 0x3b9   : > { %1431 = vmax.xlane.f32.xlu0 %v1430_v41 }
 0x41e   : > { %v1071_v46 = vpop.f32.mrb[12].mxu1 }
 0x41f   : > { %v1309_v47 = vmul.f32 0.17677669, %v1071_v46  ;;  %v3011_v48 = vpop.f32.mrb[13].mxu1 }
 0x420   : > { %v1074_v49 = vpop.f32.mrb[14].mxu1 }
 0x421   : > { %v3012_v52 = vpop.f32.mrb[15].mxu1  ;;  %v4092_v53 = vadd.f32 %v1389_v45, %v1309_v47 }
 0x423   : > { %v1433_v55 = vsel %vm1426_vm5, %v4092_v53, -inf }
 0x424   : > { %1434 = vmax.xlane.f32.xlu0 %v1433_v55 }
 0x425   : > { %v1163_v57 = vpop.f32.mrb[4].mxu0 }
 0x426   : > { %v1311_v60 = vmul.f32 0.17677669, %v1163_v57  ;;  %v1117_v62 = vpop.f32.mrb[16].mxu1  ;;  %v3023_v1 = vpop.f32.mrb[5].mxu0 }
 0x427   : > { %v1310_v3 = vmul.f32 0.17677669, %v1117_v62  ;;  %v3017_v4 = vpop.f32.mrb[17].mxu1  ;;  %v1166_v5 = vpop.f32.mrb[6].mxu0 }
 0x428   : > { %v1120_v6 = vpop.f32.mrb[18].mxu1  ;;  %v3024_v7 = vpop.f32.mrb[7].mxu0  ;;  %v1422_v8 = vadd.f32 %v1397_v56, %v1311_v60 }
 0x429   : > { %v3018_v10 = vpop.f32.mrb[19].mxu1  ;;  %v1421_v11 = vadd.f32 %v1393_v58, %v1310_v3 }
 0x42a   : > { %v1439_v13 = vsel %vm1426_vm5, %v1422_v8, -inf }
 0x42b   : > { %1440 = vmax.xlane.f32.xlu0 %v1439_v13  ;;  %v1436_v14 = vsel %vm1426_vm5, %v1421_v11, -inf }
 0x42c   : > { %1437 = vmax.xlane.f32.xlu1 %v1436_v14  ;;  %v3253_v14 = vpack.i.bf16 %v4058_v2, %v4043_v50 }
 0x42d   : > { %v1255_v16 = vpop.f32.mrb[8].mxu0 }
 0x42e   : > { %v1313_v19 = vmul.f32 0.17677669, %v1255_v16  ;;  %v1209_v20 = vpop.f32.mrb[20].mxu1  ;;  %v3035_v21 = vpop.f32.mrb[9].mxu0 }
 0x42f   : > { %v1312_v22 = vmul.f32 0.17677669, %v1209_v20  ;;  %v3029_v23 = vpop.f32.mrb[21].mxu1  ;;  %v1258_v24 = vpop.f32.mrb[10].mxu0 }
 0x430   : > { %v1212_v25 = vpop.f32.mrb[22].mxu1  ;;  %v3036_v26 = vpop.f32.mrb[11].mxu0  ;;  %v1424_v17 = vadd.f32 %v1405_v15, %v1313_v19 }
 0x431   : > { %v3030_v27 = vpop.f32.mrb[23].mxu1  ;;  %v4102_v29 = vadd.f32 %v1401_v18, %v1312_v22 }
 0x432   : > { %v1445_v31 = vsel %vm1426_vm5, %v1424_v17, -inf }
 0x433   : > { %1446 = vmax.xlane.f32.xlu0 %v1445_v31  ;;  %v1442_v32 = vsel %vm1426_vm5, %v4102_v29, -inf }
 0x434   : > { %1443 = vmax.xlane.f32.xlu1 %v1442_v32 }
 0x436   : > { %v1301_v36 = vpop.f32.mrb[24].mxu1 }
 0x437   : > { %v1314_v38 = vmul.f32 0.17677669, %v1301_v36  ;;  %v3041_v39 = vpop.f32.mrb[25].mxu1 }
 0x438   : > { %v1304_v41 = vpop.f32.mrb[26].mxu1 }
 0x439   : > { %v3042_v42 = vpop.f32.mrb[27].mxu1  ;;  %v4108_v43 = vadd.f32 %v1409_v35, %v1314_v38 }
 0x43b   : > { %v1448_v44 = vsel %vm1426_vm5, %v4108_v43, -inf }
 0x43c   : > { %1449 = vmax.xlane.f32.xlu1 %v1448_v44 }
 0x43e   : > { %v1429_v45 = vpop.xlane.xlu1 %1428 }
 0x43f   : > { %v1451_v46 = vsub.f32 %v4082_v28, %v1429_v45 }
 0x441   : > { %v1459_v47 = vmul.f32 1.442695, %v1451_v46 }
 0x443   : > { %3358 = vpow2.f32 %v1459_v47 }
 0x446   : > { %v1432_v48 = vpop.xlane.xlu0 %1431 }
 0x447   : > { %v1452_v49 = vsub.f32 %v4087_v40, %v1432_v48 }
 0x449   : > { %v1461_v51 = vmul.f32 1.442695, %v1452_v49 }
 0x44b   : > { %3360 = vpow2.f32 %v1461_v51 }
 0x44d   : > { %v3359_v52 = vpop.eup %3358 }
 0x44e   : > { %v1475_v54 = vsel %vm1426_vm5, %v3359_v52, 0.0 }
 0x44f   : > { %1476 = vadd.xlane.f32.xlu0 %v1475_v54 }
 0x455   : > { %v3361_v55 = vpop.eup %3360 }
 0x456   : > { %v1478_v56 = vsel %vm1426_vm5, %v3361_v55, 0.0 }
 0x457   : > { %1479 = vadd.xlane.f32.xlu1 %v1478_v56 }
 0x4b1   : > { %v1435_v57 = vpop.xlane.xlu0 %1434 }
 0x4b2   : > { %v1453_v58 = vsub.f32 %v4092_v53, %v1435_v57 }
 0x4b4   : > { %v1463_v59 = vmul.f32 1.442695, %v1453_v58 }
 0x4b6   : > { %3362 = vpow2.f32 %v1463_v59 }
 0x4b8   : > { %v1441_v28 = vpop.xlane.xlu0 %1440 }
 0x4b9   : > { %v1455_v60 = vsub.f32 %v1422_v8, %v1441_v28  ;;  %v1438_v62 = vpop.xlane.xlu1 %1437 }
 0x4ba   : > { %v1454_v1 = vsub.f32 %v1421_v11, %v1438_v62 }
 0x4bb   : > { %v1467_v40 = vmul.f32 1.442695, %v1455_v60 }
 0x4bc   : > { %v1465_v3 = vmul.f32 1.442695, %v1454_v1 }
 0x4bd   : > { %3364 = vpow2.f32 %v1467_v40 }
 0x4be   : > { %3366 = vpow2.f32 %v1465_v3 }
 0x4c0   : > { %v4117_v4 = vpop.eup %3362  ;;  %v1447_v5 = vpop.xlane.xlu0 %1446 }
 0x4c1   : > { %v1457_v6 = vsub.f32 %v1424_v17, %v1447_v5  ;;  %v1481_v7 = vsel %vm1426_vm5, %v4117_v4, 0.0  ;;  %v1444_v15 = vpop.xlane.xlu1 %1443 }
 0x4c2   : > { %1482 = vadd.xlane.f32.xlu0 %v1481_v7  ;;  %v1456_v22 = vsub.f32 %v4102_v29, %v1444_v15 }
 0x4c3   : > { %v1471_v9 = vmul.f32 1.442695, %v1457_v6 }
 0x4c4   : > { %v1469_v24 = vmul.f32 1.442695, %v1456_v22 }
 0x4c5   : > { %3368 = vpow2.f32 %v1471_v9 }
 0x4c7   : > { %v4121_v53 = vpop.eup %3364 }
 0x4c8   : > { %v3367_v10 = vpop.eup %3366  ;;  %v1487_v8 = vsel %vm1426_vm5, %v4121_v53, 0.0 }
 0x4c9   : > { %1488 = vadd.xlane.f32.xlu0 %v1487_v8  ;;  %v1484_v11 = vsel %vm1426_vm5, %v3367_v10, 0.0  ;;  %v1450_v18 = vpop.xlane.xlu1 %1449 }
 0x4ca   : > { %1485 = vadd.xlane.f32.xlu1 %v1484_v11  ;;  %v1458_v50 = vsub.f32 %v4108_v43, %v1450_v18 }
 0x4cc   : > { %v1473_v26 = vmul.f32 1.442695, %v1458_v50 }
 0x4cf   : > { %v4126_v12 = vpop.eup %3368 }
 0x4d0   : > { %v1493_v13 = vsel %vm1426_vm5, %v4126_v12, 0.0 }
 0x4d1   : > { %1494 = vadd.xlane.f32.xlu0 %v1493_v13 }
 0x4db   : > { %3254 = vrot.lane.b32.xlu1 %v3253_v14, %s3657_s19 }
 0x4dc   : > { %v1477_v16 = vpop.xlane.xlu0 %1476 }
 0x4dd   : > { %3370 = vrcp.f32 %v1477_v16 }
 0x4e4   : > { %v1480_v19 = vpop.xlane.xlu1 %1479 }
 0x4e5   : > { %3372 = vrcp.f32 %v1480_v19 }
 0x4e6   : > { %3374 = vpow2.f32 %v1469_v24 }
 0x4e7   : > { %v3371_v20 = vpop.eup %3370  ;;  %3249 = vrot.lane.b32.xlu0 %v3253_v14, %s3656_s24  ;;  %3376 = vpow2.f32 %v1473_v26 }
 0x4e8   : > { %v1507_v21 = vmul.f32 %v3371_v20, %v3359_v52 }
 0x4ea   : > { %v1515_v23 = vpack.c.bf16 %v1507_v21, %v1507_v21 }
 0x4ec   : > { %3046 = vmatmul.mubr.msk.bf16.vlgmr.msra.gmra.mrb[12].mxu0 %vm1426_vm5, %v1515_v23 }
 0x4ed   : > { %3057 = vmatprep.mubr.msk.bf16.mxu0 %vm3655_vm0, %v3654_v34 }
 0x4ef   : > { %v3373_v2 = vpop.eup %3372 }
 0x4f0   : > { %v1508_v25 = vmul.f32 %v3373_v2, %v3361_v55  ;;  %v4142_v27 = vpop.eup %3374 }
 0x4f1   : > { %v1490_v29 = vsel %vm1426_vm5, %v4142_v27, 0.0  ;;  %v4146_v30 = vpop.eup %3376 }
 0x4f2   : > { %v1516_v17 = vpack.c.bf16 %v1508_v25, %v1508_v25  ;;  %v1496_v31 = vsel %vm1426_vm5, %v4146_v30, 0.0 }
 0x4f4   : > { %3052 = vmatmul.mubr.msk.bf16.vlgmr.msra.gmra.mrb[28].mxu1 %vm1426_vm5, %v1516_v17  ;;  %v3310_v17 = vld [vmem:[%s3943_s12] sm:$0xff]  }
 0x4f5   : > { %3063 = vmatprep.mubr.msk.bf16.mxu1 %vm3655_vm0, %v3654_v34 }
 0x4ff   : > { %1491 = vadd.xlane.f32.xlu1 %v1490_v29  ;;  %v3312_v29 = vld [vmem:[%s3943_s12 + $0x10] sm:$0xff]  }
 0x503   : > { %1497 = vadd.xlane.f32.xlu1 %v1496_v31 }
 0x514   : > { %3259 = vrot.lane.b32.xlu1 %v3253_v14, %s3658_s23 }
 0x54f   : > { %v1483_v32 = vpop.xlane.xlu0 %1482 }
 0x550   : > { %3378 = vrcp.f32 %v1483_v32 }
 0x556   : > { %v1489_v36 = vpop.xlane.xlu0 %1488 }
 0x557   : > { %v1486_v35 = vpop.xlane.xlu1 %1485 }
 0x558   : > { %3380 = vrcp.f32 %v1486_v35 }
 0x559   : > { %3382 = vrcp.f32 %v1489_v36 }
 0x55a   : > { %v3379_v41 = vpop.eup %3378 }
 0x55b   : > { %v3255_v39 = vpop.permute.xlu1 %3254  ;;  %v1509_v48 = vmul.f32 %v3379_v41, %v4117_v4 }
 0x55c   : > { %v3257_v44 = vunpack.i.h.bf16 %v3255_v39  ;;  %v3256_v45 = vunpack.i.l.bf16 %v3255_v39  ;;  %v3313_v39 = vld [vmem:[%s3943_s12 + $0x18] sm:$0xff]  }
 0x55d   : > { %v1517_v58 = vpack.c.bf16 %v1509_v48, %v1509_v48  ;;  %v3315_v48 = vld [vmem:[%s3943_s12 + $0x28] sm:$0xff]  }
 0x55e   : > { %v1495_v38 = vpop.xlane.xlu0 %1494  ;;  %v1528_v54 = vpack.c.bf16 %v3257_v44, %v3257_v44  ;;  %v1527_v55 = vpack.c.bf16 %v3256_v45, %v3256_v45 }
 0x55f   : > { %3384 = vrcp.f32 %v1495_v38 }
 0x560   : > { %v1719_v60 = vsel %vm1324_vm2, %v1527_v55, 0  ;;  %v1765_v62 = vsel %vm1324_vm2, %v1528_v54, 0 }
 0x562   : > { %v3381_v42 = vpop.eup %3380  ;;  %v3250_v43 = vpop.permute.xlu0 %3249 }
 0x563   : > { %v3252_v46 = vunpack.i.h.bf16 %v3250_v43  ;;  %v3251_v47 = vunpack.i.l.bf16 %v3250_v43  ;;  %v1510_v49 = vmul.f32 %v3381_v42, %v3367_v10  ;;  %v3383_v28 = vpop.eup %3382  ;;  %v3314_v43 = vld [vmem:[%s3943_s12 + $0x20] sm:$0xff]  }
 0x564   : > { %v1511_v1 = vmul.f32 %v3383_v28, %v4121_v53 }
 0x565   : > { %v1526_v51 = vpack.c.bf16 %v3252_v46, %v3252_v46  ;;  %v1525_v52 = vpack.c.bf16 %v3251_v47, %v3251_v47  ;;  %v1518_v59 = vpack.c.bf16 %v1510_v49, %v1510_v49  ;;  %v3316_v49 = vld [vmem:[%s3943_s12 + $0x30] sm:$0xff]  }
 0x566   : > { %v1519_v40 = vpack.c.bf16 %v1511_v1, %v1511_v1 }
 0x567   : > { %v1627_v56 = vsel %vm1324_vm2, %v1525_v52, 0  ;;  %v1673_v57 = vsel %vm1324_vm2, %v1526_v51, 0  ;;  %v3317_v51 = vld [vmem:[%s3943_s12 + $0x38] sm:$0xff]  }
 0x568   : > { %3056 = vmatpush3.bf16.msra.mxu0 %v1627_v56  ;;  %3062 = vmatpush3.bf16.msra.mxu1 %v1673_v57 }
 0x569   : > { %3067 = vmatprep.subr.bf16.mxu0 %v3654_v34  ;;  %3073 = vmatprep.subr.bf16.mxu1 %v3654_v34  ;;  %v3385_v5 = vpop.eup %3384 }
 0x56a   : > { %v1513_v10 = vmul.f32 %v3385_v5, %v4126_v12 }
 0x56b   : > { %3058 = vmatmul.mubr.msk.bf16.vlgmr.msra.gmra.mrb[16].mxu0 %vm1426_vm5, %v1517_v58  ;;  %3064 = vmatmul.mubr.msk.bf16.vlgmr.msra.gmra.mrb[32].mxu1 %vm1426_vm5, %v1518_v59 }
 0x56c   : > { %3068 = vmatpush3.bf16.msra.mxu0 %v1719_v60  ;;  %3074 = vmatpush3.bf16.msra.mxu1 %v1765_v62  ;;  %v1521_v18 = vpack.c.bf16 %v1513_v10, %v1513_v10 }
 0x56d   : > { %3069 = vmatprep.mubr.msk.bf16.mxu0 %vm3655_vm0, %v3654_v34  ;;  %3079 = vmatprep.subr.bf16.mxu0 %v3654_v34 }
 0x56e   : > { %3075 = vmatprep.mubr.msk.bf16.mxu1 %vm3655_vm0, %v3654_v34  ;;  %3085 = vmatprep.subr.bf16.mxu1 %v3654_v34 }
 0x573   : > { %3070 = vmatmul.mubr.msk.bf16.vlgmr.msra.gmra.mrb[20].mxu0 %vm1426_vm5, %v1519_v40 }
 0x574   : > { %3081 = vmatprep.mubr.msk.bf16.mxu0 %vm3655_vm0, %v3654_v34 }
 0x58c   : > { %v1492_v3 = vpop.xlane.xlu1 %1491 }
 0x58d   : > { %3386 = vrcp.f32 %v1492_v3 }
 0x590   : > { %v1498_v4 = vpop.xlane.xlu1 %1497 }
 0x591   : > { %3388 = vrcp.f32 %v1498_v4 }
 0x594   : > { %v3260_v6 = vpop.permute.xlu1 %3259 }
 0x595   : > { %v3262_v7 = vunpack.i.h.bf16 %v3260_v6  ;;  %v3261_v9 = vunpack.i.l.bf16 %v3260_v6 }
 0x597   : > { %v3387_v53 = vpop.eup %3386  ;;  %v1529_v8 = vpack.c.bf16 %v3261_v9, %v3261_v9  ;;  %v1530_v13 = vpack.c.bf16 %v3262_v7, %v3262_v7 }
 0x598   : > { %v1512_v11 = vmul.f32 %v3387_v53, %v4142_v27  ;;  %v3311_v27 = vld [vmem:[%s3943_s12 + $0x8] sm:$0xff]  }
 0x599   : > { %v1811_v14 = vsel %vm1324_vm2, %v1529_v8, 0  ;;  %v1857_v19 = vsel %vm1324_vm2, %v1530_v13, 0 }
 0x59a   : > { %3080 = vmatpush3.bf16.msra.mxu0 %v1811_v14  ;;  %v1520_v15 = vpack.c.bf16 %v1512_v11, %v1512_v11 }
 0x59b   : > { %v3389_v16 = vpop.eup %3388  ;;  %3091 = vmatprep.subr.bf16.mxu0 %v3654_v34 }
 0x59c   : > { %3076 = vmatmul.mubr.msk.bf16.vlgmr.msra.gmra.mrb[36].mxu1 %vm1426_vm5, %v1520_v15  ;;  %v1514_v12 = vmul.f32 %v3389_v16, %v4146_v30 }
 0x59d   : > { %3086 = vmatpush3.bf16.msra.mxu1 %v1857_v19  ;;  %3082 = vmatmul.mubr.msk.bf16.vlgmr.msra.gmra.mrb[24].mxu0 %vm1426_vm5, %v1521_v18 }
 0x59e   : > { %3087 = vmatprep.mubr.msk.bf16.mxu1 %vm3655_vm0, %v3654_v34  ;;  %3107 = vmatprep.mubr.msk.bf16.mxu0 %vm3655_vm0, %v3654_v34  ;;  %v1522_v20 = vpack.c.bf16 %v1514_v12, %v1514_v12 }
 0x59f   : > { %3092 = vmatpush3.bf16.msra.mxu0 %v3310_v17 }
 0x5a0   : > { %3093 = vmatprep.subr.bf16.mxu0 %v3654_v34 }
 0x5a3   : > { %3094 = vmatpush3.bf16.msra.mxu0 %v3311_v27  ;;  %v3407_v27 = vld [vmem:[#allocation10 + $0x8] sm:$0xff] }
 0x5a4   : > { %3088 = vmatmul.mubr.msk.bf16.vlgmr.msra.gmra.mrb[40].mxu1 %vm1426_vm5, %v1522_v20  ;;  %3095 = vmatprep.subr.bf16.mxu0 %v3654_v34  ;;  %v1950_v20 = vsub.s32 3, %v4001_v61 }
 0x5a5   : > { %2215 = vmatprep.mubr.bf16.mxu1 %v3653_v33 }
 0x5a7   : > { %3096 = vmatpush3.bf16.msra.mxu0 %v3312_v29 }
 0x5a8   : > { %3097 = vmatprep.subr.bf16.mxu0 %v3654_v34 }
 0x5ab   : > { %3098 = vmatpush3.bf16.msra.mxu0 %v3313_v39 }
 0x5ac   : > { %3099 = vmatprep.subr.bf16.mxu0 %v3654_v34 }
 0x5af   : > { %3100 = vmatpush3.bf16.msra.mxu0 %v3314_v43 }
 0x5b0   : > { %3101 = vmatprep.subr.bf16.mxu0 %v3654_v34 }
 0x5b3   : > { %3102 = vmatpush3.bf16.msra.mxu0 %v3315_v48  ;;  %v3327_v48 = vld [vmem:[%s3924_s16 + $0x30] ss:$8 sps:$4 sm:$0xff]  }
 0x5b4   : > { %3103 = vmatprep.subr.bf16.mxu0 %v3654_v34 }
 0x5b7   : > { %3104 = vmatpush3.bf16.msra.mxu0 %v3316_v49  ;;  %v3332_v49 = vld [vmem:[%s3924_s16 + $0x44] ss:$8 sps:$4 sm:$0xff]  }
 0x5b8   : > { %3105 = vmatprep.subr.bf16.mxu0 %v3654_v34 }
 0x5bb   : > { %3106 = vmatpush3.bf16.msra.mxu0 %v3317_v51  ;;  %v3330_v51 = vld [vmem:[%s3924_s16 + $0x40] ss:$8 sps:$4 sm:$0xff]  }
 0x5bf   : > { %v4184_v21 = vpop.f32.mrb[12].mxu0 }
 0x5c0   : > { %v3047_v22 = vpop.f32.mrb[13].mxu0 }
 0x5c1   : > { %v1574_v23 = vpop.f32.mrb[14].mxu0  ;;  %v1951_v22 = vrot.slane %v4005_v63, %v1950_v20  ;;  %v3347_v20 = vld [vmem:[%s3930_s29 + $0x10] sm:$0xff]  }
 0x5c2   : > { %v3048_v24 = vpop.f32.mrb[15].mxu0 }
 0x5c7   : > { %v4186_v50 = vpop.f32.mrb[28].mxu1 }
 0x5c8   : > { %v3053_v2 = vpop.f32.mrb[29].mxu1 }
 0x5c9   : > { %v1620_v25 = vpop.f32.mrb[30].mxu1 }
 0x5ca   : > { %v3054_v26 = vpop.f32.mrb[31].mxu1 }
 0x5cb   : > { %v3406_v26 = vld [vmem:[#allocation10] sm:$0xff] }
 0x63e   : > { %v1663_v33 = vpop.f32.mrb[16].mxu0  ;;  %v1709_v30 = vpop.f32.mrb[32].mxu1 }
 0x63f   : > { %v3263_v31 = vpack.i.bf16 %v1709_v30, %v1663_v33  ;;  %v3059_v32 = vpop.f32.mrb[17].mxu0  ;;  %v3065_v35 = vpop.f32.mrb[33].mxu1  ;;  %v3318_v33 = vld [vmem:[%s3924_s16] ss:$8 sps:$4 sm:$0xff]   ;;  %v3320_v30 = vld [vmem:[%s3924_s16 + $0x4] ss:$8 sps:$4 sm:$0xff]  }
 0x640   : > { %v1666_v36 = vpop.f32.mrb[18].mxu0  ;;  %v1712_v38 = vpop.f32.mrb[34].mxu1  ;;  %2183 = vmatprep.subr.bf16.mxu1 %v3320_v30  ;;  %v3321_v32 = vld [vmem:[%s3924_s16 + $0x10] ss:$8 sps:$4 sm:$0xff]  }
 0x641   : > { %v3060_v41 = vpop.f32.mrb[19].mxu0  ;;  %3264 = vrot.lane.b32.xlu0 %v3263_v31, %s3658_s23  ;;  %v3066_v42 = vpop.f32.mrb[35].mxu1  ;;  %v3323_v31 = vld [vmem:[%s3924_s16 + $0x14] ss:$8 sps:$4 sm:$0xff]   ;;  %2184 = vmatpush1.bf16.msra.mxu1 %v3318_v33 }
 0x642   : > { %2185 = vmatprep.subr.bf16.mxu1 %v3323_v31  ;;  %v597_v33 = vld [vmem:[%s3932_s20 + $0x8] sm:$0xff] }
 0x643   : > { %v2102_v31 = vrot.slane %v597_v33, %v4008_v0 }
 0x645   : > { %2186 = vmatpush1.bf16.msra.mxu1 %v3321_v32 }
 0x646   : > { %v1755_v44 = vpop.f32.mrb[20].mxu0 }
 0x647   : > { %v3071_v45 = vpop.f32.mrb[21].mxu0 }
 0x648   : > { %v1758_v46 = vpop.f32.mrb[22].mxu0  ;;  %v3326_v45 = vld [vmem:[%s3924_s16 + $0x24] ss:$8 sps:$4 sm:$0xff]  }
 0x649   : > { %v3072_v47 = vpop.f32.mrb[23].mxu0  ;;  %v3324_v46 = vld [vmem:[%s3924_s16 + $0x20] ss:$8 sps:$4 sm:$0xff]   ;;  %2187 = vmatprep.subr.bf16.mxu1 %v3326_v45 }
 0x64a   : > { %2188 = vmatpush1.bf16.msra.mxu1 %v3324_v46  ;;  %v3329_v47 = vld [vmem:[%s3924_s16 + $0x34] ss:$8 sps:$4 sm:$0xff]  }
 0x64b   : > { %2189 = vmatprep.subr.bf16.mxu1 %v3329_v47 }
 0x64e   : > { %2190 = vmatpush1.bf16.msra.mxu1 %v3327_v48 }
 0x64f   : > { %2191 = vmatprep.subr.bf16.mxu1 %v3332_v49 }
 0x652   : > { %2192 = vmatpush1.bf16.msra.mxu1 %v3330_v51 }
 0x66f   : > { %v1801_v52 = vpop.f32.mrb[36].mxu1 }
 0x670   : > { %v3268_v54 = vpack.i.bf16 %v1801_v52, %v1755_v44  ;;  %v3077_v55 = vpop.f32.mrb[37].mxu1  ;;  %v1847_v56 = vpop.f32.mrb[24].mxu0  ;;  %v3335_v52 = vld [vmem:[%s3924_s16 + $0x54] ss:$8 sps:$4 sm:$0xff]  }
 0x671   : > { %v1804_v57 = vpop.f32.mrb[38].mxu1  ;;  %v3083_v58 = vpop.f32.mrb[25].mxu0  ;;  %2193 = vmatprep.subr.bf16.mxu1 %v3335_v52  ;;  %v3338_v55 = vld [vmem:[%s3924_s16 + $0x64] ss:$8 sps:$4 sm:$0xff]  }
 0x672   : > { %v1850_v59 = vpop.f32.mrb[26].mxu0  ;;  %3269 = vrot.lane.b32.xlu1 %v3268_v54, %s3657_s19  ;;  %v3078_v28 = vpop.f32.mrb[39].mxu1  ;;  %v3333_v54 = vld [vmem:[%s3924_s16 + $0x50] ss:$8 sps:$4 sm:$0xff]   ;;  %v3341_v57 = vld [vmem:[%s3924_s16 + $0x74] ss:$8 sps:$4 sm:$0xff]  }
 0x673   : > { %v3084_v60 = vpop.f32.mrb[27].mxu0  ;;  %2194 = vmatpush1.bf16.msra.mxu1 %v3333_v54  ;;  %v3339_v58 = vld [vmem:[%s3924_s16 + $0x70] ss:$8 sps:$4 sm:$0xff]  }
 0x674   : > { %2195 = vmatprep.subr.bf16.mxu1 %v3338_v55 }
 0x677   : > { %v1893_v62 = vpop.f32.mrb[40].mxu1 }
 0x678   : > { %v3273_v1 = vpack.i.bf16 %v1893_v62, %v1847_v56  ;;  %v3089_v40 = vpop.f32.mrb[41].mxu1  ;;  %v3336_v56 = vld [vmem:[%s3924_s16 + $0x60] ss:$8 sps:$4 sm:$0xff]  }
 0x679   : > { %v1896_v3 = vpop.f32.mrb[42].mxu1  ;;  %2196 = vmatpush1.bf16.msra.mxu1 %v3336_v56 }
 0x67a   : > { %3274 = vrot.lane.b32.xlu0 %v3273_v1, %s3656_s24  ;;  %v3090_v34 = vpop.f32.mrb[43].mxu1  ;;  %2197 = vmatprep.subr.bf16.mxu1 %v3341_v57  ;;  %v2068_v3 = vsub.s32 5, %v4001_v61 }
 0x67c   : > { %v2069_v34 = vrot.slane %v4005_v63, %v2068_v3 }
 0x67d   : > { %2198 = vmatpush1.bf16.msra.mxu1 %v3339_v58 }
 0x6b3   : > { %v3265_v4 = vpop.permute.xlu0 %3264 }
 0x6b4   : > { %v3267_v6 = vunpack.i.h.bf16 %v3265_v4  ;;  %v3266_v7 = vunpack.i.l.bf16 %v3265_v4  ;;  %v2074_v4 = vsub.s32 6, %v4001_v61 }
 0x6b6   : > { %v1924_v8 = vsel %vm938_vm1, %v4186_v50, %v3267_v6  ;;  %v1923_v11 = vsel %vm938_vm1, %v4184_v21, %v3266_v7 }
 0x6e4   : > { %v3270_v5 = vpop.permute.xlu1 %3269 }
 0x6e5   : > { %v3272_v9 = vunpack.i.h.bf16 %v3270_v5  ;;  %v3271_v53 = vunpack.i.l.bf16 %v3270_v5 }
 0x6e7   : > { %v1927_v15 = vsel %vm1925_vm6, %v1924_v8, %v3272_v9  ;;  %v1926_v16 = vsel %vm1925_vm6, %v1923_v11, %v3271_v53 }
 0x6ec   : > { %v3275_v10 = vpop.permute.xlu0 %3274 }
 0x6ed   : > { %v3277_v13 = vunpack.i.h.bf16 %v3275_v10  ;;  %v3276_v14 = vunpack.i.l.bf16 %v3275_v10  ;;  %v4232_v10 = vld [vmem:[%s3948_s10] sm:$0xff] }
 0x6ee   : > { %v2075_v8 = vrot.slane %v4232_v10, %v2074_v4 }
 0x6ef   : > { %v1930_v18 = vsel %vm1928_vm7, %v1927_v15, %v3277_v13  ;;  %v1929_v19 = vsel %vm1928_vm7, %v1926_v16, %v3276_v14  ;;  %v3342_v15 = vld [vmem:[%s3930_s29 + $0x40] sm:$0xff]  }
 0x6f0   : > { %v1931_v12 = vpack.c.bf16 %v1930_v18, %v1929_v19  ;;  %v3343_v16 = vld [vmem:[%s3930_s29] sm:$0xff]   ;;  %2944 = vmatprep.subr.bf16.mxu0 %v3342_v15  ;;  %v3344_v18 = vld [vmem:[%s3930_s29 + $0x48] sm:$0xff]  }
 0x6f1   : > { %v3345_v19 = vld [vmem:[%s3930_s29 + $0x8] sm:$0xff]  }
 0x6f2   : > { %3108 = vmatmul.mubr.bf16.vlgmr.msra.gmra.mrb[28].mxu0 %v1931_v12  ;;  %v3346_v12 = vld [vmem:[%s3930_s29 + $0x50] sm:$0xff]  }
 0x6f3   : > { %2945 = vmatpush3.bf16.msra.mxu0 %v3343_v16 }
 0x6f4   : > { %2946 = vmatprep.subr.bf16.mxu0 %v3344_v18 }
 0x6f7   : > { %2947 = vmatpush3.bf16.msra.mxu0 %v3345_v19 }
 0x6f8   : > { %2948 = vmatprep.subr.bf16.mxu0 %v3346_v12 }
 0x6fb   : > { %2949 = vmatpush3.bf16.msra.mxu0 %v3347_v20 }
 0x7c5   : > { %v2034_v23 = vpop.f32.mrb[28].mxu0 }
 0x7c6   : > { %v2035_v24 = vadd.f32 %v2034_v23, %v1951_v22  ;;  %v3109_v50 = vpop.f32.mrb[29].mxu0  ;;  %v3349_v23 = vld [vmem:[%s3930_s29 + $0x18] sm:$0xff]  }
 0x7c7   : > { %v2037_v21 = vpop.f32.mrb[30].mxu0  ;;  %v3351_v50 = vld [vmem:[%s3930_s29 + $0x20] sm:$0xff]  }
 0x7c8   : > { %v2038_v2 = vadd.f32 %v2037_v21, %v1951_v22  ;;  %v3110_v25 = vpop.f32.mrb[31].mxu0  ;;  %v2041_v17 = vadd.f32 %v3406_v26, %v2035_v24  ;;  %v3348_v22 = vld [vmem:[%s3930_s29 + $0x58] sm:$0xff]   ;;  %v3350_v24 = vld [vmem:[%s3930_s29 + $0x60] sm:$0xff]   ;;  %v3352_v21 = vld [vmem:[%s3930_s29 + $0x68] sm:$0xff]  }
 0x7c9   : > { %2950 = vmatprep.subr.bf16.mxu0 %v3348_v22  ;;  %v3354_v25 = vld [vmem:[%s3930_s29 + $0x70] sm:$0xff]  }
 0x7ca   : > { %2043 = vadd.xlane.f32.xlu1 %v2041_v17  ;;  %v2042_v29 = vadd.f32 %v3407_v27, %v2038_v2  ;;  %2951 = vmatpush3.bf16.msra.mxu0 %v3349_v23  ;;  %v3353_v2 = vld [vmem:[%s3930_s29 + $0x28] sm:$0xff]   ;;  %v3355_v26 = vld [vmem:[%s3930_s29 + $0x30] sm:$0xff]   ;;  %v3357_v27 = vld [vmem:[%s3930_s29 + $0x38] sm:$0xff]  }
 0x7cb   : > { %2952 = vmatprep.subr.bf16.mxu0 %v3350_v24  ;;  %v2298_v24 = vsub.s32 4, %v4001_v61 }
 0x7cc   : > { %2045 = vadd.xlane.f32.xlu0 %v2042_v29 }
 0x7ce   : > { %2953 = vmatpush3.bf16.msra.mxu0 %v3351_v50 }
 0x7cf   : > { %2954 = vmatprep.subr.bf16.mxu0 %v3352_v21  ;;  %v2299_v21 = vrot.slane %v4232_v10, %v2298_v24 }
 0x7d2   : > { %2955 = vmatpush3.bf16.msra.mxu0 %v3353_v2 }
 0x7d3   : > { %2956 = vmatprep.subr.bf16.mxu0 %v3354_v25 }
 0x7d6   : > { %2957 = vmatpush3.bf16.msra.mxu0 %v3355_v26 }
 0x857   : > { %v2044_v35 = vpop.xlane.xlu1 %2043 }
 0x858   : > { %v2048_v36 = vmul.f32 0.0078125, %v2044_v35 }
 0x859   : > { %v2046_v38 = vpop.xlane.xlu0 %2045 }
 0x85a   : > { %v2050_v39 = vsub.f32 %v2041_v17, %v2048_v36  ;;  %v2049_v41 = vmul.f32 0.0078125, %v2046_v38  ;;  %v3356_v17 = vld [vmem:[%s3930_s29 + $0x78] sm:$0xff]  }
 0x85b   : > { %2958 = vmatprep.subr.bf16.mxu0 %v3356_v17 }
 0x85c   : > { %v2051_v42 = vsub.f32 %v2042_v29, %v2049_v41  ;;  %v2052_v43 = vmul.f32 %v2050_v39, %v2050_v39  ;;  %2959 = vmatpush3.bf16.msra.mxu0 %v3357_v27  ;;  %v596_v29 = vld [vmem:[%s3932_s20] sm:$0xff] }
 0x85d   : > { %v2098_v30 = vrot.slane %v596_v29, %v4008_v0 }
 0x85e   : > { %2054 = vadd.xlane.f32.xlu0 %v2052_v43  ;;  %v2053_v44 = vmul.f32 %v2051_v42, %v2051_v42 }
 0x860   : > { %2056 = vadd.xlane.f32.xlu1 %v2053_v44 }
 0x8eb   : > { %v2055_v59 = vpop.xlane.xlu0 %2054 }
 0x8ec   : > { %v2058_v28 = vmul.f32 0.0078125, %v2055_v59 }
 0x8ed   : > { %v2057_v60 = vpop.xlane.xlu1 %2056 }
 0x8ee   : > { %v2060_v62 = vadd.f32 1e-12, %v2058_v28  ;;  %v2059_v1 = vmul.f32 0.0078125, %v2057_v60 }
 0x8f0   : > { %3390 = vrsqrt.f32 %v2060_v62  ;;  %v2061_v40 = vadd.f32 1e-12, %v2059_v1 }
 0x8f2   : > { %3392 = vrsqrt.f32 %v2061_v40 }
 0x8fa   : > { %v3391_v5 = vpop.eup %3390 }
 0x8fb   : > { %v2064_v6 = vmul.f32 %v3391_v5, %v2050_v39 }
 0x8fc   : > { %v3393_v7 = vpop.eup %3392 }
 0x8fd   : > { %v2065_v9 = vmul.f32 %v3393_v7, %v2051_v42  ;;  %v2070_v53 = vmul.f32 %v2069_v34, %v2064_v6 }
 0x8ff   : > { %v2071_v11 = vmul.f32 %v2069_v34, %v2065_v9  ;;  %v4235_v13 = vadd.f32 %v2075_v8, %v2070_v53 }
 0x901   : > { %v4237_v63 = vadd.f32 %v2075_v8, %v2071_v11 }
 0x903   : > { %v2078_v14 = vpack.c.bf16 %v4237_v63, %v4235_v13 }
 0x905   : > { %2216 = vmatmul.mubr.bf16.vlgmr.msra.gmra.mrb[44].mxu1 %v2078_v14 }
 0x9d8   : > { %v2217_v32 = vpop.f32.mrb[44].mxu1 }
 0x9d9   : > { %v2218_v35 = vadd.f32 %v2217_v32, %v2098_v30  ;;  %v2219_v36 = vpop.f32.mrb[45].mxu1 }
 0x9da   : > { %v2220_v38 = vadd.f32 %v2219_v36, %v2102_v31  ;;  %v2221_v39 = vpop.f32.mrb[46].mxu1 }
 0x9db   : > { %v2230_v41 = vmul.f32 0.044715, %v2218_v35  ;;  %v2222_v42 = vadd.f32 %v2221_v39, %v2098_v30  ;;  %v2223_v43 = vpop.f32.mrb[47].mxu1  ;;  %v2226_v53 = vmul.f32 0.5, %v2218_v35 }
 0x9dc   : > { %v2231_v44 = vmul.f32 0.044715, %v2220_v38  ;;  %v2224_v45 = vadd.f32 %v2223_v43, %v2102_v31  ;;  %v2227_v14 = vmul.f32 0.5, %v2220_v38 }
 0x9dd   : > { %v2234_v46 = vmul.f32 %v2230_v41, %v2218_v35  ;;  %v2232_v47 = vmul.f32 0.044715, %v2222_v42  ;;  %v2228_v8 = vmul.f32 0.5, %v2222_v42 }
 0x9de   : > { %v2235_v48 = vmul.f32 %v2231_v44, %v2220_v38  ;;  %v2233_v49 = vmul.f32 0.044715, %v2224_v45  ;;  %v2229_v15 = vmul.f32 0.5, %v2224_v45 }
 0x9df   : > { %v2238_v51 = vmul.f32 %v2234_v46, %v2218_v35  ;;  %v2236_v52 = vmul.f32 %v2232_v47, %v2222_v42 }
 0x9e0   : > { %v2239_v54 = vmul.f32 %v2235_v48, %v2220_v38  ;;  %v2237_v55 = vmul.f32 %v2233_v49, %v2224_v45  ;;  %v595_v49 = vld [vmem:[%s3948_s10 + $0x8] sm:$0xff] }
 0x9e1   : > { %v2242_v56 = vadd.f32 %v2238_v51, %v2218_v35  ;;  %v2240_v57 = vmul.f32 %v2236_v52, %v2222_v42 }
 0x9e2   : > { %v2241_v58 = vmul.f32 %v2237_v55, %v2224_v45  ;;  %v2243_v59 = vadd.f32 %v2239_v54, %v2220_v38  ;;  %v2470_v54 = vrot.slane %v595_v49, %v4008_v0  ;;  %v3410_v0 = vld [vmem:[%s4366_s9 + $0x8] sm:$0xff] (!%p2874_p5)  }
 0x9e3   : > { %v2246_v28 = vmul.f32 0.7978846, %v2242_v56  ;;  %v2244_v60 = vadd.f32 %v2240_v57, %v2222_v42 }
 0x9e4   : > { %v2245_v62 = vadd.f32 %v2241_v58, %v2224_v45  ;;  %v2247_v1 = vmul.f32 0.7978846, %v2243_v59 }
 0x9e5   : > { %3394 = vtanh.f32 %v2246_v28  ;;  %v2248_v40 = vmul.f32 0.7978846, %v2244_v60 }
 0x9e6   : > { %v2249_v3 = vmul.f32 0.7978846, %v2245_v62  ;;  %3396 = vtanh.f32 %v2247_v1  ;;  %v3409_v62 = vld [vmem:[%s4366_s9] sm:$0xff] (!%p2874_p5)   ;;  %v3411_v1 = vld [vmem:[%s4366_s9 + $0x10] sm:$0xff] (!%p2874_p5)  }
 0x9e7   : > { %3398 = vtanh.f32 %v2248_v40  ;;  %v3412_v40 = vld [vmem:[%s4366_s9 + $0x18] sm:$0xff] (!%p2874_p5)  }
 0x9e8   : > { %3400 = vtanh.f32 %v2249_v3  ;;  %v3413_v3 = vld [vmem:[%s4366_s9 + $0x20] sm:$0xff] (!%p2874_p5)  }
 0x9ef   : > { %v3395_v34 = vpop.eup %3394 }
 0x9f0   : > { %v3397_v4 = vpop.eup %3396  ;;  %v2254_v5 = vadd.f32 1.0, %v3395_v34 }
 0x9f1   : > { %v3399_v6 = vpop.eup %3398  ;;  %v2255_v7 = vadd.f32 1.0, %v3397_v4  ;;  %v3414_v4 = vld [vmem:[%s4366_s9 + $0x28] sm:$0xff] (!%p2874_p5)  }
 0x9f2   : > { %v3401_v9 = vpop.eup %3400  ;;  %v2256_v11 = vadd.f32 1.0, %v3399_v6  ;;  %v2258_v18 = vmul.f32 %v2254_v5, %v2226_v53 }
 0x9f3   : > { %v2257_v16 = vadd.f32 1.0, %v3401_v9  ;;  %v2259_v12 = vmul.f32 %v2255_v7, %v2227_v14  ;;  %v3415_v7 = vld [vmem:[%s4366_s9 + $0x30] sm:$0xff] (!%p2874_p5)  }
 0x9f4   : > { %v2260_v19 = vmul.f32 %v2256_v11, %v2228_v8  ;;  %v3416_v8 = vld [vmem:[%s4366_s9 + $0x38] sm:$0xff] (!%p2874_p5)  }
 0x9f5   : > { %v2261_v20 = vmul.f32 %v2257_v16, %v2229_v15  ;;  %v2497_v15 = vld [vmem:[%s4359_s2] sm:$0xff] (!%p2874_p5) }
 0x9f6   : > { %v2262_v22 = vpack.c.bf16 %v2260_v19, %v2258_v18  ;;  %v2501_v16 = vrot.slane (!%p2874_p5), %v2497_v15, %v858_v37 }
 0x9f7   : > { %v2263_v23 = vpack.c.bf16 %v2261_v20, %v2259_v12 }
 0x9f9   : > { %2428 = vmatprep.mubr.bf16.mxu0 %v2263_v23 }
 0x9fa   : > { %2429 = vmatmul.mubr.bf16.vlgmr.msra.gmra.mrb[32].mxu0 %v2262_v22 }
 0xacd   : > { %v2960_v50 = vpop.f32.mrb[32].mxu0 }
 0xace   : > { %v2961_v2 = vpop.f32.mrb[33].mxu0 }
 0xacf   : > { %v2962_v25 = vadd.f32 %v2961_v2, %v2960_v50  ;;  %v2963_v26 = vpop.f32.mrb[34].mxu0 }
 0xad0   : > { %v2964_v17 = vpop.f32.mrb[35].mxu0 }
 0xad1   : > { %v2431_v27 = vadd.f32 %v2962_v25, %v2299_v21  ;;  %v2965_v29 = vadd.f32 %v2964_v17, %v2963_v26 }
 0xad3   : > { %v2434_v33 = vadd.f32 %v2965_v29, %v2299_v21  ;;  %v2437_v30 = vadd.f32 %v2431_v27, %v4235_v13 }
 0xad5   : > { %2439 = vadd.xlane.f32.xlu0 %v2437_v30  ;;  %v2438_v31 = vadd.f32 %v2434_v33, %v4237_v63  ;;  %v2463_v63 = vsub.s32 7, %v4001_v61 }
 0xad7   : > { %2441 = vadd.xlane.f32.xlu1 %v2438_v31  ;;  %v2464_v51 = vrot.slane %v4232_v10, %v2463_v63  ;;  %v3660_v10 = vmov (!%p2874_p5), 0.0  }
 0xad8   : > { %3111 = vmatprep.subr.bf16.mxu0 (!%p2874_p5), %v3660_v10  ;;  %3127 = vmatprep.mubr.msk.bf16.mxu0 (!%p2874_p5), %vm3661_vm8, %v3660_v10 }
 0xad9   : > { %3112 = vmatpush3.bf16.msra.mxu0 (!%p2874_p5), %v3409_v62 }
 0xada   : > { %3113 = vmatprep.subr.bf16.mxu0 (!%p2874_p5), %v3660_v10 }
 0xadd   : > { %3114 = vmatpush3.bf16.msra.mxu0 (!%p2874_p5), %v3410_v0 }
 0xade   : > { %3115 = vmatprep.subr.bf16.mxu0 (!%p2874_p5), %v3660_v10 }
 0xae1   : > { %3116 = vmatpush3.bf16.msra.mxu0 (!%p2874_p5), %v3411_v1 }
 0xae2   : > { %3117 = vmatprep.subr.bf16.mxu0 (!%p2874_p5), %v3660_v10 }
 0xae5   : > { %3118 = vmatpush3.bf16.msra.mxu0 (!%p2874_p5), %v3412_v40 }
 0xae6   : > { %3119 = vmatprep.subr.bf16.mxu0 (!%p2874_p5), %v3660_v10 }
 0xae9   : > { %3120 = vmatpush3.bf16.msra.mxu0 (!%p2874_p5), %v3413_v3 }
 0xaea   : > { %3121 = vmatprep.subr.bf16.mxu0 (!%p2874_p5), %v3660_v10 }
 0xaed   : > { %3122 = vmatpush3.bf16.msra.mxu0 (!%p2874_p5), %v3414_v4 }
 0xaee   : > { %3123 = vmatprep.subr.bf16.mxu0 (!%p2874_p5), %v3660_v10 }
 0xaf1   : > { %3124 = vmatpush3.bf16.msra.mxu0 (!%p2874_p5), %v3415_v7 }
 0xaf2   : > { %3125 = vmatprep.subr.bf16.mxu0 (!%p2874_p5), %v3660_v10 }
 0xaf5   : > { %3126 = vmatpush3.bf16.msra.mxu0 (!%p2874_p5), %v3416_v8 }
 0xb62   : > { %v2440_v32 = vpop.xlane.xlu0 %2439 }
 0xb63   : > { %v2443_v35 = vmul.f32 0.0078125, %v2440_v32 }
 0xb64   : > { %v2442_v36 = vpop.xlane.xlu1 %2441 }
 0xb65   : > { %v2445_v38 = vsub.f32 %v2437_v30, %v2443_v35  ;;  %v2444_v39 = vmul.f32 0.0078125, %v2442_v36 }
 0xb67   : > { %v2446_v41 = vsub.f32 %v2438_v31, %v2444_v39  ;;  %v2447_v42 = vmul.f32 %v2445_v38, %v2445_v38 }
 0xb69   : > { %2449 = vadd.xlane.f32.xlu0 %v2447_v42  ;;  %v2448_v43 = vmul.f32 %v2446_v41, %v2446_v41 }
 0xb6b   : > { %2451 = vadd.xlane.f32.xlu1 %v2448_v43 }
 0xbf6   : > { %v2450_v44 = vpop.xlane.xlu0 %2449 }
 0xbf7   : > { %v2453_v45 = vmul.f32 0.0078125, %v2450_v44 }
 0xbf8   : > { %v2452_v46 = vpop.xlane.xlu1 %2451 }
 0xbf9   : > { %v2455_v47 = vadd.f32 1e-12, %v2453_v45  ;;  %v2454_v13 = vmul.f32 0.0078125, %v2452_v46 }
 0xbfb   : > { %3402 = vrsqrt.f32 %v2455_v47  ;;  %v2456_v48 = vadd.f32 1e-12, %v2454_v13 }
 0xbfd   : > { %3404 = vrsqrt.f32 %v2456_v48 }
 0xc05   : > { %v3403_v52 = vpop.eup %3402 }
 0xc06   : > { %v2459_v55 = vmul.f32 %v3403_v52, %v2445_v38 }
 0xc07   : > { %v3405_v56 = vpop.eup %3404 }
 0xc08   : > { %v2465_v57 = vmul.f32 %v2464_v51, %v2459_v55  ;;  %v2460_v58 = vmul.f32 %v3405_v56, %v2446_v41  ;;  %2478 = sbr.rel (%p2874_p5) target bundleno = 3321 (0xcf9), region = 84 }
 0xc0a   : > { %v2471_v59 = vadd.f32 %v2470_v54, %v2465_v57  ;;  %v2466_v28 = vmul.f32 %v2464_v51, %v2460_v58 }
 0xc0c   : > { %2473 = vst [vmem:[#allocation10] sm:$0xff] %v2471_v59  ;;  %v2472_v60 = vadd.f32 %v2470_v54, %v2466_v28  ;;  %v2479_v5 = vpack.c.bf16 (!%p2874_p5), %v2471_v59, %v2471_v59 }
 0xc0e   : > { %2474 = vst [vmem:[#allocation10 + $0x8] sm:$0xff] %v2472_v60  ;;  %v2480_v34 = vpack.c.bf16 (!%p2874_p5), %v2472_v60, %v2472_v60  ;;  %v2504_v9 = vunpack.c.l.b16 (!%p2874_p5), %v2479_v5 }
 0xc10   : > { %v2505_v6 = vunpack.c.l.b16 %v2480_v34 }
 0xc12   : > { %v2506_v53 = vrot.slane %v2505_v6, 7 }
 0xc14   : > { %v2508_v11 = vsel %vm2507_vm9, %v2506_v53, %v2504_v9 }
 0xc15   : > { %v2509_v14 = vpack.c.b16 %v2508_v11, %v2508_v11 }
 0xc17   : > { %3128 = vmatmul.mubr.bf16.vlgmr.msra.gmra.mrb[0].mxu0 %v2509_v14 }
 0xcea   : > { %v2593_v18 = vpop.f32.mrb[0].mxu0 }
 0xceb   : > { %v2594_v19 = vadd.f32 %v2593_v18, %v2501_v16  ;;  %v3129_v12 = vpop.f32.mrb[1].mxu0 }
 0xcec   : > { %v2596_v20 = vpop.f32.mrb[2].mxu0 }
 0xced   : > { %3417 = vtanh.f32 %v2594_v19  ;;  %v3130_v22 = vpop.f32.mrb[3].mxu0 }
 0xcf7   : > { %v3418_v23 = vpop.eup %3417 }
 0xcf8   : > { %2600 = vst [vmem:[#allocation11] sm:$0x3] %v3418_v23 }
 0xcf9 PF: > { %p3164_p6 = scmp.eq.s32.totalorder %s3745_s21, 1  ;;  %s3662_s15 = smov [#allocation10]  }
 0xcfa   : > { %s2607_s17 = sshll.u32 %s3662_s15, 4  ;;  %s2608_s17 = int_to_ptr.vmem [resolvable:$true] %s2607_s17 }
 0xcfb   : > { %s3539_s16 = scalar_lea.vmem %s2608_s17, 256  ;;  %p3546_p13 = scmp.lt.s32.totalorder %s2608_s17, %s2608_s17 }
 0xcfc   : > { %p3540_p4 = scmp.ne.s32.totalorder %s2608_s17, %s3539_s16  ;;  %p3547_p9 = scmp.lt.s32.totalorder %s3539_s16, %s3539_s16 }
 0xcfe   : > { %p3541_p1 = pnand %p3540_p4, %p3164_p6  ;;  %p3548_p0 = por %p3547_p9, %p3546_p13 }
 0xd00   : > { %p3542_p11 = pneg %p3541_p1 }
 0xd02   : > { %p3549_p2 = pnand %p3548_p0, %p3542_p11 }
 0xd04   : > { %3552 = shalt.err (!%p3549_p2)
}
 0xd05   : > { %s4394_s27 = sld [smem:[#allocation22_spill]] }
 0xd0b   : > { %s3553_s14 = scalar_lea.hbm %s4394_s27, 256 }
 0xd0c   : > { %p3554_p12 = scmp.ne.s32.totalorder %s4394_s27, %s3553_s14  ;;  %p3559_p8 = scmp.lt.u32.totalorder %s3553_s14, %s4394_s27 }
 0xd0e   : > { %p3555_p7 = pnand %p3554_p12, %p3164_p6 }
 0xd10   : > { %p3556_p10 = pneg %p3555_p7 }
 0xd12   : > { %p3561_p3 = pnand %p3559_p8, %p3556_p10 }
 0xd14   : > { %3564 = shalt.err (!%p3561_p3)
}
 0xd15   : > { %s3663_s26 = smov 128   ;;  %s3664_s5 = smov 8  }
 0xd16   : > { %3143 = dma.vmem_to_hbm [thread:$0]  (%p3164_p6), %s2608_s17, 256, %s4394_s27, [#allocation4], %s3663_s26, %s3663_s26, %s3664_s5  }
 0xd17   : > { %s3665_s25 = smov [#allocation11]  }
 0xd18   : > { %s2621_s11 = sshll.u32 %s3665_s25, 4  ;;  %s2622_s11 = int_to_ptr.vmem [resolvable:$true] %s2621_s11 }
 0xd19   : > { %s3565_s24 = scalar_lea.vmem %s2622_s11, 32  ;;  %p3572_p11 = scmp.lt.s32.totalorder %s2622_s11, %s2622_s11 }
 0xd1a   : > { %p3566_p5 = scmp.ne.s32.totalorder %s2622_s11, %s3565_s24  ;;  %p3573_p13 = scmp.lt.s32.totalorder %s3565_s24, %s3565_s24 }
 0xd1c   : > { %p3567_p4 = pnand %p3566_p5, %p3164_p6  ;;  %p3574_p9 = por %p3573_p13, %p3572_p11 }
 0xd1e   : > { %p3568_p1 = pneg %p3567_p4 }
 0xd20   : > { %p3575_p0 = pnand %p3574_p9, %p3568_p1 }
 0xd22   : > { %3578 = shalt.err (!%p3575_p0)
}
 0xd23   : > { %s4395_s15 = sld [smem:[#allocation23_spill]] }
 0xd29   : > { %s3579_s16 = scalar_lea.hbm %s4395_s15, 32 }
 0xd2a   : > { %p3580_p2 = scmp.ne.s32.totalorder %s4395_s15, %s3579_s16  ;;  %p3585_p10 = scmp.lt.u32.totalorder %s3579_s16, %s4395_s15 }
 0xd2c   : > { %p3581_p12 = pnand %p3580_p2, %p3164_p6 }
 0xd2e   : > { %p3582_p7 = pneg %p3581_p12 }
 0xd30   : > { %p3587_p8 = pnand %p3585_p10, %p3582_p7 }
 0xd32   : > { %3590 = shalt.err (!%p3587_p8)
}
 0xd33   : > { %3145 = dma.vmem_to_hbm [thread:$0]  (%p3164_p6), %s2622_s11, 32, %s4395_s15, [#allocation12]  }
 0xd34   : > { %3620 = dma.done.wait (%p3164_p6), [#allocation4], 256  }
 0xd35   : > { %3622 = vsyncadd (%p3164_p6), [#allocation4], 4294967040 }
 0xd36   : > { %3624 = dma.done.wait (%p3164_p6), [#allocation12], 32  }
 0xd37   : > { %3626 = vsyncadd (%p3164_p6), [#allocation12], 4294967264 }
 0xd38 PF: > { %s4396_s20 = sld [smem:[#allocation19_spill]]  ;;  %s4397_s30 = sld [smem:[#allocation18_spill]] }
 0xd39   : > { %s4398_s19 = sld [smem:[#allocation20_spill]]  ;;  %s4399_s17 = smov %s3633_s18 }
 0xd3e   : > { %p30_p3 = scmp.ge.s32.totalorder %s4396_s20, 4   ;;  %s4400_s18 = smov %s4397_s30 }
 0xd40   :  { %32 = sbr.rel (!%p30_p3) target bundleno = 13 (0xd), region = 156 }
 0xd47   :  { %2638 = vsyncpa [#allocation3], 1 }
 0xd48   :  { %2640 = vsyncpa [#allocation3 + $0x1], 1 }
 0xd49   :  { %2641 = vsyncpa [#allocation6], 1 }
 0xd4a   :  { %2643 = vsyncpa [#allocation6 + $0x1], 1 }
 0xd4b   :  { %2644 = vsyncpa [#allocation9], 1 }
 0xd4c   :  { %2646 = vsyncpa [#allocation9 + $0x1], 1 }
 0xd4d   :  { %2647 = vsyncpa [#allocation4], 1 }
 0xd4e   :  { %2649 = vsyncpa [#allocation4 + $0x1], 1 }
 0xd4f   :  { %2650 = vsyncpa [#allocation12], 1 }

</bundles_post_ra>
